<compile_context>
chip_gen: v7x
topology: tpu7x:2x2x1
jax: 0.10.0
libtpu: 0.0.40
codegen_flags: <defaults>
</compile_context>

<pallas_src>
import functools
import math

import jax
import jax.numpy as jnp
from jax.experimental import pallas as pl
from jax.experimental.pallas import tpu as pltpu


# ----------------------- in-kernel helpers -----------------------

def _gelu_exact(x):
    # matches torch.nn.GELU() (erf-based, not tanh approximation)
    return 0.5 * x * (1.0 + jax.lax.erf(x * (1.0 / math.sqrt(2.0))))


def _layernorm(x, gamma, beta, eps=1e-5):
    mean = jnp.mean(x, axis=-1, keepdims=True)
    var = jnp.mean((x - mean) ** 2, axis=-1, keepdims=True)
    return (x - mean) * jax.lax.rsqrt(var + eps) * gamma + beta


# ----------------------- fused Pallas kernel -----------------------

def mixer_fused_kernel(patches_ref, ew_ref, eb_ref,
                       g1_ref, b1_ref, tw1_ref, tb1_ref, tw2_ref, tb2_ref,
                       g2_ref, b2_ref, cw1_ref, cb1_ref, cw2_ref, cb2_ref,
                       hw_ref, hb_ref,
                       tokens_ref, logits_ref,
                       *, compute_dtype, row_chunk):
    l = pl.program_id(1)                      # layer index ("arbitrary" axis)
    Bl, P, K = patches_ref.shape              # local batch handled by this block
    rows, D = tokens_ref.shape                # rows = Bl * P (residual rows)
    num_chunks = rows // row_chunk
    cdt = compute_dtype

    def mm(a, b):
        # matmul operands in compute_dtype (bf16-native MXU), f32 accumulation
        return jnp.dot(a.astype(cdt), b.astype(cdt),
                       preferred_element_type=jnp.float32)

    # ---- patch embedding: initializes the VMEM-resident residual (layer 0) ----
    @pl.when(l == 0)
    def _():
        p2d = patches_ref[...].reshape(rows, K)                 # (Bl*P, K)
        tokens_ref[...] = mm(p2d, ew_ref[...]) + eb_ref[...]

    # ---- token mixing: one batch element (P rows) at a time ----
    # transpose-free form: h = W1 @ y, tok = W2 @ h (biases broadcast as columns)
    g1, b1 = g1_ref[0], b1_ref[0]
    tw1, tb1 = tw1_ref[0], tb1_ref[0]         # (T, P), (T, 1)
    tw2, tb2 = tw2_ref[0], tb2_ref[0]         # (P, T), (P, 1)

    @pl.loop(0, Bl)
    def _(b):
        r0 = b * P
        if P % 8 == 0:
            r0 = pl.multiple_of(r0, 8)
        xb = tokens_ref[pl.ds(r0, P), :]                        # (P, D) f32
        y = _layernorm(xb, g1, b1)
        h = _gelu_exact(mm(tw1, y) + tb1)                       # (T, D)
        tokens_ref[pl.ds(r0, P), :] = xb + mm(tw2, h) + tb2     # residual add

    # ---- channel mixing: row_chunk rows at a time (bounds (chunk, Cd) temp) ----
    g2, b2 = g2_ref[0], b2_ref[0]
    cw1, cb1 = cw1_ref[0], cb1_ref[0]         # (D, Cd), (1, Cd)
    cw2, cb2 = cw2_ref[0], cb2_ref[0]         # (Cd, D), (1, D)

    @pl.loop(0, num_chunks)
    def _(c):
        r0 = c * row_chunk
        if row_chunk % 8 == 0:
            r0 = pl.multiple_of(r0, 8)
        xb = tokens_ref[pl.ds(r0, row_chunk), :]                # (chunk, D) f32
        y = _layernorm(xb, g2, b2)
        h = _gelu_exact(mm(y, cw1) + cb1)                       # (chunk, Cd)
        tokens_ref[pl.ds(r0, row_chunk), :] = xb + mm(h, cw2) + cb2

    # ---- global average pool + classifier head (last layer only) ----
    @pl.when(l == pl.num_programs(1) - 1)
    def _():
        x3 = tokens_ref[...].reshape(Bl, P, D)
        pooled = jnp.mean(x3, axis=1)                           # (Bl, D) f32
        logits_ref[0] = mm(pooled, hw_ref[...]) + hb_ref[...]   # (Bl, NCp)


# ----------------------- pallas_call wrapper -----------------------

_LAYER_KEYS = ("ln1_g", "ln1_b", "tw1", "tb1", "tw2", "tb2",
               "ln2_g", "ln2_b", "cw1_t", "cb1", "cw2_t", "cb2")
_MATMUL_KEYS = frozenset({"tw1", "tw2", "cw1_t", "cw2_t"})


def extract_patches(x_nchw, patch_size):
    B, C, H, W = x_nchw.shape
    Hp, Wp = H // patch_size, W // patch_size
    p = x_nchw.reshape(B, C, Hp, patch_size, Wp, patch_size)
    p = p.transpose(0, 2, 4, 1, 3, 5)            # (B, Hp, Wp, C, ps, ps)
    return p.reshape(B, Hp * Wp, C * patch_size * patch_size)


def _spec(shape, index_map, buffers):
    # pipeline_mode lets us single-buffer grid-invariant inputs (halves their
    # VMEM footprint) and deepen per-layer weight buffering (e.g. 3 on v5e).
    try:
        return pl.BlockSpec(shape, index_map, pipeline_mode=pl.Buffered(buffers))
    except (AttributeError, TypeError):
        return pl.BlockSpec(shape, index_map)    # older jax: default buffering


def mlp_mixer_forward(x_nchw, params, patch_size, *,
                      compute_dtype=jnp.bfloat16, batch_blocks=1,
                      row_chunk=512, weight_buffers=2):
    """Fused MLP-Mixer forward. Returns (tokens (B,P,D) f32, logits (B,NC) f32)."""
    cdt = compute_dtype
    patches = extract_patches(x_nchw, patch_size).astype(cdt)   # (B, P, K)
    B, P, K = patches.shape
    D = params["embed_w_t"].shape[1]
    L = params["tw1"].shape[0]
    NC = params["head_w_t"].shape[1]
    NCp = -(-NC // 128) * 128                  # lane-dense classifier width

    NB = batch_blocks                          # leading "parallel" grid axis
    assert B % NB == 0, "batch must divide evenly across batch_blocks"
    Bl = B // NB
    rows = Bl * P                              # residual rows owned per block

    # channel-mixing row chunk: divides `rows`, multiple of 8 when possible
    if rows <= row_chunk:
        chunk = rows
    else:
        chunk = rows
        for c in range(row_chunk - row_chunk % 8, 7, -8):
            if rows % c == 0:
                chunk = c
                break

    # pre-cast matmul weights (and patches) to the compute dtype; biases,
    # LayerNorm params and the residual stream stay float32.
    ew = params["embed_w_t"].astype(cdt)                         # (K, D)
    eb = params["embed_b"]                                       # (1, D) f32
    hw = jnp.zeros((D, NCp), cdt).at[:, :NC].set(params["head_w_t"].astype(cdt))
    hb = jnp.zeros((1, NCp), jnp.float32).at[:, :NC].set(params["head_b"])

    layer_inputs, layer_specs = [], []
    for k in _LAYER_KEYS:
        a = params[k].astype(cdt) if k in _MATMUL_KEYS else params[k]
        layer_inputs.append(a)
        layer_specs.append(_spec((1,) + a.shape[1:],
                                 lambda nb, l: (l, 0, 0), weight_buffers))

    def invariant(a):                          # DMA'd once, single buffered
        zeros = (0,) * a.ndim
        return _spec(a.shape, lambda nb, l, zeros=zeros: zeros, 1)

    in_specs = ([_spec((Bl, P, K), lambda nb, l: (nb, 0, 0), 1),
                 invariant(ew), invariant(eb)]
                + layer_specs
                + [invariant(hw), invariant(hb)])

    out_specs = (
        # residual stream: constant index along the layer axis -> VMEM
        # resident accumulator, written back to HBM once per batch block
        pl.BlockSpec((rows, D), lambda nb, l: (nb, 0)),
        pl.BlockSpec((1, Bl, NCp), lambda nb, l: (nb, 0, 0)),
    )
    out_shape = (jax.ShapeDtypeStruct((B * P, D), jnp.float32),
                 jax.ShapeDtypeStruct((NB, Bl, NCp), jnp.float32))

    tokens_flat, logits_pad = pl.pallas_call(
        functools.partial(mixer_fused_kernel, compute_dtype=cdt, row_chunk=chunk),
        out_shape=out_shape,
        grid=(NB, L),
        in_specs=in_specs,
        out_specs=out_specs,
        compiler_params=pltpu.CompilerParams(
            dimension_semantics=("parallel", "arbitrary"),
            vmem_limit_bytes=56 * 1024 * 1024),   # fits v7x; > defaults elsewhere
    )(patches, ew, eb, *layer_inputs, hw, hb)

    tokens = tokens_flat.reshape(B, P, D)
    logits = logits_pad.reshape(B, NCp)[:, :NC]
    return tokens, logits


# ----------------------- parameter init (deterministic) -----------------------

def _xavier_uniform(key, shape):
    fan_out, fan_in = shape
    bound = math.sqrt(6.0 / (fan_in + fan_out))
    return jax.random.uniform(key, shape, jnp.float32, -bound, bound)


def init_params(key, *, in_channel, dim, num_classes, patch_size,
                num_patch, token_dim, channel_dim, num_layers):
    K = in_channel * patch_size * patch_size
    keys = jax.random.split(key, 1 + 8 * num_layers)

    # conv (patch embedding): kaiming_normal_, zero bias
    conv_w = jax.random.normal(keys[0], (dim, K), jnp.float32) * math.sqrt(2.0 / K)

    layers = {k: [] for k in _LAYER_KEYS}
    ki = 1
    for _ in range(num_layers):
        k = keys[ki:ki + 8]; ki += 8
        layers["ln1_g"].append(jnp.ones((1, dim), jnp.float32))
        layers["ln1_b"].append(jnp.zeros((1, dim), jnp.float32))
        layers["tw1"].append(_xavier_uniform(k[0], (token_dim, num_patch)))   # Linear(P->T)
        layers["tb1"].append(jax.random.normal(k[4], (token_dim, 1), jnp.float32) * 1e-6)
        layers["tw2"].append(_xavier_uniform(k[1], (num_patch, token_dim)))   # Linear(T->P)
        layers["tb2"].append(jax.random.normal(k[5], (num_patch, 1), jnp.float32) * 1e-6)
        layers["ln2_g"].append(jnp.ones((1, dim), jnp.float32))
        layers["ln2_b"].append(jnp.zeros((1, dim), jnp.float32))
        layers["cw1_t"].append(_xavier_uniform(k[2], (channel_dim, dim)).T)   # (D, Cd)
        layers["cb1"].append(jax.random.normal(k[6], (1, channel_dim), jnp.float32) * 1e-6)
        layers["cw2_t"].append(_xavier_uniform(k[3], (dim, channel_dim)).T)   # (Cd, D)
        layers["cb2"].append(jax.random.normal(k[7], (1, dim), jnp.float32) * 1e-6)

    params = {
        "embed_w_t": conv_w.T,                                     # (K, D)
        "embed_b": jnp.zeros((1, dim), jnp.float32),
        "head_w_t": jnp.zeros((dim, num_classes), jnp.float32),    # module zero-init
        "head_b": jnp.full((1, num_classes), -math.log(num_classes), jnp.float32),
    }
    params.update({k: jnp.stack(v) for k, v in layers.items()})    # (L, ...)
    return params


# ----------------------- plain-JAX reference -----------------------

def mlp_mixer_reference(x_nchw, params, patch_size, compute_dtype=jnp.float32):
    def mm(a, b):
        return jnp.matmul(a.astype(compute_dtype), b.astype(compute_dtype),
                          preferred_element_type=jnp.float32)

    patches = extract_patches(x_nchw, patch_size)
    x = mm(patches, params["embed_w_t"]) + params["embed_b"]       # (B, P, D)
    L = params["tw1"].shape[0]
    for l in range(L):
        y = _layernorm(x, params["ln1_g"][l], params["ln1_b"][l])
        yt = jnp.swapaxes(y, 1, 2)                                 # (B, D, P)
        h = _gelu_exact(mm(yt, params["tw1"][l].T) + params["tb1"][l].T)
        tok = jnp.swapaxes(mm(h, params["tw2"][l].T) + params["tb2"][l].T, 1, 2)
        x = x + tok
        y = _layernorm(x, params["ln2_g"][l], params["ln2_b"][l])
        h = _gelu_exact(mm(y, params["cw1_t"][l]) + params["cb1"][l])
        x = x + mm(h, params["cw2_t"][l]) + params["cb2"][l]
    pooled = jnp.mean(x, axis=1)
    logits = mm(pooled, params["head_w_t"]) + params["head_b"]
    return x, logits


# ----------------------- main -----------------------

if __name__ == "__main__":
    # small, lane/sublane-friendly config consistent with the module:
    # in_channel=3, dim=128, num_classes=2, patch_size=4, img_size=16
    # -> num_patch=(16//4)**2=16, token_dim=32, channel_dim=256, num_layers=2
    B, C, IMG, PS = 2, 3, 16, 4
    DIM, NUM_CLASSES, TOKEN_DIM, CHANNEL_DIM, NUM_LAYERS = 128, 2, 32, 256, 2
    NUM_PATCH = (IMG // PS) ** 2

    key = jax.random.PRNGKey(0)
    k_x, k_p, k_h = jax.random.split(key, 3)
    x = jax.random.normal(k_x, (B, C, IMG, IMG), jnp.float32)

    params = init_params(
        k_p, in_channel=C, dim=DIM, num_classes=NUM_CLASSES, patch_size=PS,
        num_patch=NUM_PATCH, token_dim=TOKEN_DIM, channel_dim=CHANNEL_DIM,
        num_layers=NUM_LAYERS)
    # the module zero-inits the head weight; randomize it here so the head
    # matmul path is actually exercised by the check (review correctness note)
    params["head_w_t"] = 0.1 * jax.random.normal(k_h, (DIM, NUM_CLASSES), jnp.float32)

    # 1) default bf16-MXU path, with multi-chunk channel mixing exercised
    tok, lg = mlp_mixer_forward(x, params, PS, row_chunk=16)
    tok, lg = jax.block_until_ready((tok, lg))
    tok_rb, lg_rb = mlp_mixer_reference(x, params, PS, compute_dtype=jnp.bfloat16)
    assert tok.shape == (B, NUM_PATCH, DIM)
    assert lg.shape == (B, NUM_CLASSES)
    assert jnp.allclose(tok, tok_rb, atol=2e-2, rtol=2e-2)
    assert jnp.allclose(lg, lg_rb, atol=2e-2, rtol=2e-2)

    # 2) exact float32 path — matches the PyTorch module semantics
    tok32, lg32 = mlp_mixer_forward(x, params, PS, compute_dtype=jnp.float32)
    tok32, lg32 = jax.block_until_ready((tok32, lg32))
    tok_rf, lg_rf = mlp_mixer_reference(x, params, PS, compute_dtype=jnp.float32)
    assert jnp.allclose(tok32, tok_rf, atol=2e-3, rtol=2e-3)
    assert jnp.allclose(lg32, lg_rf, atol=2e-3, rtol=2e-3)

    # 3) batch-parallel leading grid axis (uses both TensorCores on v7x;
    #    plain sequential outer loop on single-core parts)
    tok2, lg2 = mlp_mixer_forward(x, params, PS, batch_blocks=2)
    tok2, lg2 = jax.block_until_ready((tok2, lg2))
    assert jnp.allclose(tok2, tok_rb, atol=2e-2, rtol=2e-2)
    assert jnp.allclose(lg2, lg_rb, atol=2e-2, rtol=2e-2)

    print("KERNEL_OK")
</pallas_src>

<mosaic_0001>
module attributes {stable_mosaic.version = 11 : i64} {
  func.func @mixer_fused_kernel(%arg0: i32, %arg1: i32, %arg2: memref<2x16x48xbf16, #tpu.memory_space<vmem>>, %arg3: memref<48x128xbf16, #tpu.memory_space<vmem>>, %arg4: memref<1x128xf32, #tpu.memory_space<vmem>>, %arg5: memref<1x1x128xf32, #tpu.memory_space<vmem>>, %arg6: memref<1x1x128xf32, #tpu.memory_space<vmem>>, %arg7: memref<1x32x16xbf16, #tpu.memory_space<vmem>>, %arg8: memref<1x32x1xf32, #tpu.memory_space<vmem>>, %arg9: memref<1x16x32xbf16, #tpu.memory_space<vmem>>, %arg10: memref<1x16x1xf32, #tpu.memory_space<vmem>>, %arg11: memref<1x1x128xf32, #tpu.memory_space<vmem>>, %arg12: memref<1x1x128xf32, #tpu.memory_space<vmem>>, %arg13: memref<1x128x256xbf16, #tpu.memory_space<vmem>>, %arg14: memref<1x1x256xf32, #tpu.memory_space<vmem>>, %arg15: memref<1x256x128xbf16, #tpu.memory_space<vmem>>, %arg16: memref<1x1x128xf32, #tpu.memory_space<vmem>>, %arg17: memref<128x128xbf16, #tpu.memory_space<vmem>>, %arg18: memref<1x128xf32, #tpu.memory_space<vmem>>, %arg19: memref<32x128xf32, #tpu.memory_space<vmem>>, %arg20: memref<1x2x128xf32, #tpu.memory_space<vmem>>) attributes {dimension_semantics = [#tpu.dimension_semantics<parallel>, #tpu.dimension_semantics<arbitrary>], iteration_bounds = array<i64: 1, 2>, scalar_prefetch = 0 : i64, scratch_operands = 0 : i64, tpu.core_type = #tpu.core_type<tc>, window_params = [{pipeline_mode = #tpu.pipeline_mode<synchronous>, transform_indices = @transform_0, window_bounds = array<i64: 2, 16, 48>}, {pipeline_mode = #tpu.pipeline_mode<synchronous>, transform_indices = @transform_1, window_bounds = array<i64: 48, 128>}, {pipeline_mode = #tpu.pipeline_mode<synchronous>, transform_indices = @transform_2, window_bounds = array<i64: 1, 128>}, {pipeline_mode = #tpu.pipeline_mode<double_buffered>, transform_indices = @transform_3, window_bounds = array<i64: 1, 1, 128>}, {pipeline_mode = #tpu.pipeline_mode<double_buffered>, transform_indices = @transform_4, window_bounds = array<i64: 1, 1, 128>}, {pipeline_mode = #tpu.pipeline_mode<double_buffered>, transform_indices = @transform_5, window_bounds = array<i64: 1, 32, 16>}, {pipeline_mode = #tpu.pipeline_mode<double_buffered>, transform_indices = @transform_6, window_bounds = array<i64: 1, 32, 1>}, {pipeline_mode = #tpu.pipeline_mode<double_buffered>, transform_indices = @transform_7, window_bounds = array<i64: 1, 16, 32>}, {pipeline_mode = #tpu.pipeline_mode<double_buffered>, transform_indices = @transform_8, window_bounds = array<i64: 1, 16, 1>}, {pipeline_mode = #tpu.pipeline_mode<double_buffered>, transform_indices = @transform_9, window_bounds = array<i64: 1, 1, 128>}, {pipeline_mode = #tpu.pipeline_mode<double_buffered>, transform_indices = @transform_10, window_bounds = array<i64: 1, 1, 128>}, {pipeline_mode = #tpu.pipeline_mode<double_buffered>, transform_indices = @transform_11, window_bounds = array<i64: 1, 128, 256>}, {pipeline_mode = #tpu.pipeline_mode<double_buffered>, transform_indices = @transform_12, window_bounds = array<i64: 1, 1, 256>}, {pipeline_mode = #tpu.pipeline_mode<double_buffered>, transform_indices = @transform_13, window_bounds = array<i64: 1, 256, 128>}, {pipeline_mode = #tpu.pipeline_mode<double_buffered>, transform_indices = @transform_14, window_bounds = array<i64: 1, 1, 128>}, {pipeline_mode = #tpu.pipeline_mode<synchronous>, transform_indices = @transform_15, window_bounds = array<i64: 128, 128>}, {pipeline_mode = #tpu.pipeline_mode<synchronous>, transform_indices = @transform_16, window_bounds = array<i64: 1, 128>}, {transform_indices = @transform_17, window_bounds = array<i64: 32, 128>}, {transform_indices = @transform_18, window_bounds = array<i64: 1, 2, 128>}]} {
    %c0_i32 = arith.constant 0 : i32
    %0 = arith.cmpi eq, %arg1, %c0_i32 : i32
    %1 = arith.extui %0 : i1 to i32
    %c0_i32_0 = arith.constant 0 : i32
    %2 = arith.cmpi ne, %1, %c0_i32_0 : i32
    scf.if %2 {
      %c0_44 = arith.constant 0 : index
      %c0_45 = arith.constant 0 : index
      %c0_46 = arith.constant 0 : index
      %32 = vector.load %arg2[%c0_44, %c0_45, %c0_46] : memref<2x16x48xbf16, #tpu.memory_space<vmem>>, vector<2x16x48xbf16>
      %33 = vector.shape_cast %32 : vector<2x16x48xbf16> to vector<32x48xbf16>
      %c0_47 = arith.constant 0 : index
      %c0_48 = arith.constant 0 : index
      %34 = vector.load %arg3[%c0_47, %c0_48] : memref<48x128xbf16, #tpu.memory_space<vmem>>, vector<48x128xbf16>
      %cst = arith.constant dense<0.000000e+00> : vector<32x128xf32>
      %35 = tpu.matmul %33, %34, %cst {dimension_numbers = #tpu.dot_dimension_numbers<[1], [0], [0], [1], [0, 0, 1, 1], [], []>} : vector<32x48xbf16>, vector<48x128xbf16>, vector<32x128xf32> -> vector<32x128xf32>
      %c0_49 = arith.constant 0 : index
      %c0_50 = arith.constant 0 : index
      %36 = vector.load %arg4[%c0_49, %c0_50] : memref<1x128xf32, #tpu.memory_space<vmem>>, vector<1x128xf32>
      %37 = vector.broadcast %36 : vector<1x128xf32> to vector<32x128xf32>
      %38 = arith.addf %35, %37 : vector<32x128xf32>
      %c0_51 = arith.constant 0 : index
      %c0_52 = arith.constant 0 : index
      %39 = vector.load %arg19[%c0_51, %c0_52] : memref<32x128xf32, #tpu.memory_space<vmem>>, vector<32x128xf32>
      tpu.vector_store %arg19[%c0_51, %c0_52], %38 {strides = array<i32>} : memref<32x128xf32, #tpu.memory_space<vmem>>, vector<32x128xf32>,
    } else {
    }
    %c0 = arith.constant 0 : index
    %c0_1 = arith.constant 0 : index
    %c0_2 = arith.constant 0 : index
    %3 = vector.load %arg5[%c0, %c0_1, %c0_2] : memref<1x1x128xf32, #tpu.memory_space<vmem>>, vector<1x1x128xf32>
    %4 = vector.shape_cast %3 : vector<1x1x128xf32> to vector<1x128xf32>
    %c0_3 = arith.constant 0 : index
    %c0_4 = arith.constant 0 : index
    %c0_5 = arith.constant 0 : index
    %5 = vector.load %arg6[%c0_3, %c0_4, %c0_5] : memref<1x1x128xf32, #tpu.memory_space<vmem>>, vector<1x1x128xf32>
    %6 = vector.shape_cast %5 : vector<1x1x128xf32> to vector<1x128xf32>
    %c0_6 = arith.constant 0 : index
    %c0_7 = arith.constant 0 : index
    %c0_8 = arith.constant 0 : index
    %7 = vector.load %arg7[%c0_6, %c0_7, %c0_8] : memref<1x32x16xbf16, #tpu.memory_space<vmem>>, vector<1x32x16xbf16>
    %8 = vector.shape_cast %7 : vector<1x32x16xbf16> to vector<32x16xbf16>
    %c0_9 = arith.constant 0 : index
    %c0_10 = arith.constant 0 : index
    %c0_11 = arith.constant 0 : index
    %9 = vector.load %arg8[%c0_9, %c0_10, %c0_11] : memref<1x32x1xf32, #tpu.memory_space<vmem>>, vector<1x32x1xf32>
    %10 = vector.shape_cast %9 : vector<1x32x1xf32> to vector<32x1xf32>
    %c0_12 = arith.constant 0 : index
    %c0_13 = arith.constant 0 : index
    %c0_14 = arith.constant 0 : index
    %11 = vector.load %arg9[%c0_12, %c0_13, %c0_14] : memref<1x16x32xbf16, #tpu.memory_space<vmem>>, vector<1x16x32xbf16>
    %12 = vector.shape_cast %11 : vector<1x16x32xbf16> to vector<16x32xbf16>
    %c0_15 = arith.constant 0 : index
    %c0_16 = arith.constant 0 : index
    %c0_17 = arith.constant 0 : index
    %13 = vector.load %arg10[%c0_15, %c0_16, %c0_17] : memref<1x16x1xf32, #tpu.memory_space<vmem>>, vector<1x16x1xf32>
    %14 = vector.shape_cast %13 : vector<1x16x1xf32> to vector<16x1xf32>
    %c0_i32_18 = arith.constant 0 : i32
    %c2_i32 = arith.constant 2 : i32
    %15 = arith.addi %c0_i32_18, %c2_i32 : i32
    %c1_i32 = arith.constant 1 : i32
    scf.for %arg21 = %c0_i32_18 to %15 step %c1_i32  : i32 {
      %c1_i32_44 = arith.constant 1 : i32
      %32 = arith.muli %arg21, %c1_i32_44 : i32
      %c0_i32_45 = arith.constant 0 : i32
      %33 = arith.addi %c0_i32_45, %32 : i32
      %c16_i32 = arith.constant 16 : i32
      %34 = arith.muli %33, %c16_i32 : i32
      %35 = tpu.assume_multiple %34, 8 : i32
      %36 = arith.index_cast %35 : i32 to index
      %c0_46 = arith.constant 0 : index
      %37 = vector.load %arg19[%36, %c0_46] : memref<32x128xf32, #tpu.memory_space<vmem>>, vector<16x128xf32>
      %cst = arith.constant dense<0.000000e+00> : vector<16xf32>
      %38 = vector.multi_reduction <add>, %37, %cst [1] : vector<16x128xf32> to vector<16xf32>
      %39 = vector.shape_cast %38 : vector<16xf32> to vector<16x1xf32>
      %cst_47 = arith.constant 1.280000e+02 : f32
      %40 = vector.broadcast %cst_47 : f32 to vector<16x1xf32>
      %41 = arith.divf %39, %40 : vector<16x1xf32>
      %42 = vector.broadcast %41 : vector<16x1xf32> to vector<16x128xf32>
      %43 = arith.subf %37, %42 : vector<16x128xf32>
      %44 = arith.mulf %43, %43 : vector<16x128xf32>
      %cst_48 = arith.constant dense<0.000000e+00> : vector<16xf32>
      %45 = vector.multi_reduction <add>, %44, %cst_48 [1] : vector<16x128xf32> to vector<16xf32>
      %46 = vector.shape_cast %45 : vector<16xf32> to vector<16x1xf32>
      %cst_49 = arith.constant 1.280000e+02 : f32
      %47 = vector.broadcast %cst_49 : f32 to vector<16x1xf32>
      %48 = arith.divf %46, %47 : vector<16x1xf32>
      %49 = vector.broadcast %41 : vector<16x1xf32> to vector<16x128xf32>
      %50 = arith.subf %37, %49 : vector<16x128xf32>
      %cst_50 = arith.constant 9.99999974E-6 : f32
      %51 = vector.broadcast %cst_50 : f32 to vector<16x1xf32>
      %52 = arith.addf %48, %51 : vector<16x1xf32>
      %53 = math.rsqrt %52 : vector<16x1xf32>
      %54 = vector.broadcast %53 : vector<16x1xf32> to vector<16x128xf32>
      %55 = arith.mulf %50, %54 : vector<16x128xf32>
      %56 = vector.broadcast %4 : vector<1x128xf32> to vector<16x128xf32>
      %57 = arith.mulf %55, %56 : vector<16x128xf32>
      %58 = vector.broadcast %6 : vector<1x128xf32> to vector<16x128xf32>
      %59 = arith.addf %57, %58 : vector<16x128xf32>
      %60 = arith.truncf %59 : vector<16x128xf32> to vector<16x128xbf16>
      %cst_51 = arith.constant dense<0.000000e+00> : vector<32x128xf32>
      %61 = tpu.matmul %8, %60, %cst_51 {dimension_numbers = #tpu.dot_dimension_numbers<[1], [0], [0], [1], [0, 0, 1, 1], [], []>} : vector<32x16xbf16>, vector<16x128xbf16>, vector<32x128xf32> -> vector<32x128xf32>
      %62 = vector.broadcast %10 : vector<32x1xf32> to vector<32x128xf32>
      %63 = arith.addf %61, %62 : vector<32x128xf32>
      %cst_52 = arith.constant 5.000000e-01 : f32
      %64 = vector.broadcast %cst_52 : f32 to vector<32x128xf32>
      %65 = arith.mulf %64, %63 : vector<32x128xf32>
      %cst_53 = arith.constant 0.707106769 : f32
      %66 = vector.broadcast %cst_53 : f32 to vector<32x128xf32>
      %67 = arith.mulf %63, %66 : vector<32x128xf32>
      %68 = math.erf %67 : vector<32x128xf32>
      %cst_54 = arith.constant 1.000000e+00 : f32
      %69 = vector.broadcast %cst_54 : f32 to vector<32x128xf32>
      %70 = arith.addf %69, %68 : vector<32x128xf32>
      %71 = arith.mulf %65, %70 : vector<32x128xf32>
      %72 = arith.truncf %71 : vector<32x128xf32> to vector<32x128xbf16>
      %cst_55 = arith.constant dense<0.000000e+00> : vector<16x128xf32>
      %73 = tpu.matmul %12, %72, %cst_55 {dimension_numbers = #tpu.dot_dimension_numbers<[1], [0], [0], [1], [0, 0, 1, 1], [], []>} : vector<16x32xbf16>, vector<32x128xbf16>, vector<16x128xf32> -> vector<16x128xf32>
      %74 = arith.addf %37, %73 : vector<16x128xf32>
      %75 = vector.broadcast %14 : vector<16x1xf32> to vector<16x128xf32>
      %76 = arith.addf %74, %75 : vector<16x128xf32>
      %77 = arith.index_cast %35 : i32 to index
      %c0_56 = arith.constant 0 : index
      %78 = vector.load %arg19[%77, %c0_56] : memref<32x128xf32, #tpu.memory_space<vmem>>, vector<16x128xf32>
      tpu.vector_store %arg19[%77, %c0_56], %76 {strides = array<i32>} : memref<32x128xf32, #tpu.memory_space<vmem>>, vector<16x128xf32>,
    }
    %c2_i32_19 = arith.constant 2 : i32
    %c0_20 = arith.constant 0 : index
    %c0_21 = arith.constant 0 : index
    %c0_22 = arith.constant 0 : index
    %16 = vector.load %arg11[%c0_20, %c0_21, %c0_22] : memref<1x1x128xf32, #tpu.memory_space<vmem>>, vector<1x1x128xf32>
    %17 = vector.shape_cast %16 : vector<1x1x128xf32> to vector<1x128xf32>
    %c0_23 = arith.constant 0 : index
    %c0_24 = arith.constant 0 : index
    %c0_25 = arith.constant 0 : index
    %18 = vector.load %arg12[%c0_23, %c0_24, %c0_25] : memref<1x1x128xf32, #tpu.memory_space<vmem>>, vector<1x1x128xf32>
    %19 = vector.shape_cast %18 : vector<1x1x128xf32> to vector<1x128xf32>
    %c0_26 = arith.constant 0 : index
    %c0_27 = arith.constant 0 : index
    %c0_28 = arith.constant 0 : index
    %20 = vector.load %arg13[%c0_26, %c0_27, %c0_28] : memref<1x128x256xbf16, #tpu.memory_space<vmem>>, vector<1x128x256xbf16>
    %21 = vector.shape_cast %20 : vector<1x128x256xbf16> to vector<128x256xbf16>
    %c0_29 = arith.constant 0 : index
    %c0_30 = arith.constant 0 : index
    %c0_31 = arith.constant 0 : index
    %22 = vector.load %arg14[%c0_29, %c0_30, %c0_31] : memref<1x1x256xf32, #tpu.memory_space<vmem>>, vector<1x1x256xf32>
    %23 = vector.shape_cast %22 : vector<1x1x256xf32> to vector<1x256xf32>
    %c0_32 = arith.constant 0 : index
    %c0_33 = arith.constant 0 : index
    %c0_34 = arith.constant 0 : index
    %24 = vector.load %arg15[%c0_32, %c0_33, %c0_34] : memref<1x256x128xbf16, #tpu.memory_space<vmem>>, vector<1x256x128xbf16>
    %25 = vector.shape_cast %24 : vector<1x256x128xbf16> to vector<256x128xbf16>
    %c0_35 = arith.constant 0 : index
    %c0_36 = arith.constant 0 : index
    %c0_37 = arith.constant 0 : index
    %26 = vector.load %arg16[%c0_35, %c0_36, %c0_37] : memref<1x1x128xf32, #tpu.memory_space<vmem>>, vector<1x1x128xf32>
    %27 = vector.shape_cast %26 : vector<1x1x128xf32> to vector<1x128xf32>
    %c0_i32_38 = arith.constant 0 : i32
    %c2_i32_39 = arith.constant 2 : i32
    %28 = arith.addi %c0_i32_38, %c2_i32_39 : i32
    %c1_i32_40 = arith.constant 1 : i32
    scf.for %arg21 = %c0_i32_38 to %28 step %c1_i32_40  : i32 {
      %c1_i32_44 = arith.constant 1 : i32
      %32 = arith.muli %arg21, %c1_i32_44 : i32
      %c0_i32_45 = arith.constant 0 : i32
      %33 = arith.addi %c0_i32_45, %32 : i32
      %c16_i32 = arith.constant 16 : i32
      %34 = arith.muli %33, %c16_i32 : i32
      %35 = tpu.assume_multiple %34, 8 : i32
      %36 = arith.index_cast %35 : i32 to index
      %c0_46 = arith.constant 0 : index
      %37 = vector.load %arg19[%36, %c0_46] : memref<32x128xf32, #tpu.memory_space<vmem>>, vector<16x128xf32>
      %cst = arith.constant dense<0.000000e+00> : vector<16xf32>
      %38 = vector.multi_reduction <add>, %37, %cst [1] : vector<16x128xf32> to vector<16xf32>
      %39 = vector.shape_cast %38 : vector<16xf32> to vector<16x1xf32>
      %cst_47 = arith.constant 1.280000e+02 : f32
      %40 = vector.broadcast %cst_47 : f32 to vector<16x1xf32>
      %41 = arith.divf %39, %40 : vector<16x1xf32>
      %42 = vector.broadcast %41 : vector<16x1xf32> to vector<16x128xf32>
      %43 = arith.subf %37, %42 : vector<16x128xf32>
      %44 = arith.mulf %43, %43 : vector<16x128xf32>
      %cst_48 = arith.constant dense<0.000000e+00> : vector<16xf32>
      %45 = vector.multi_reduction <add>, %44, %cst_48 [1] : vector<16x128xf32> to vector<16xf32>
      %46 = vector.shape_cast %45 : vector<16xf32> to vector<16x1xf32>
      %cst_49 = arith.constant 1.280000e+02 : f32
      %47 = vector.broadcast %cst_49 : f32 to vector<16x1xf32>
      %48 = arith.divf %46, %47 : vector<16x1xf32>
      %49 = vector.broadcast %41 : vector<16x1xf32> to vector<16x128xf32>
      %50 = arith.subf %37, %49 : vector<16x128xf32>
      %cst_50 = arith.constant 9.99999974E-6 : f32
      %51 = vector.broadcast %cst_50 : f32 to vector<16x1xf32>
      %52 = arith.addf %48, %51 : vector<16x1xf32>
      %53 = math.rsqrt %52 : vector<16x1xf32>
      %54 = vector.broadcast %53 : vector<16x1xf32> to vector<16x128xf32>
      %55 = arith.mulf %50, %54 : vector<16x128xf32>
      %56 = vector.broadcast %17 : vector<1x128xf32> to vector<16x128xf32>
      %57 = arith.mulf %55, %56 : vector<16x128xf32>
      %58 = vector.broadcast %19 : vector<1x128xf32> to vector<16x128xf32>
      %59 = arith.addf %57, %58 : vector<16x128xf32>
      %60 = arith.truncf %59 : vector<16x128xf32> to vector<16x128xbf16>
      %cst_51 = arith.constant dense<0.000000e+00> : vector<16x256xf32>
      %61 = tpu.matmul %60, %21, %cst_51 {dimension_numbers = #tpu.dot_dimension_numbers<[1], [0], [0], [1], [0, 0, 1, 1], [], []>} : vector<16x128xbf16>, vector<128x256xbf16>, vector<16x256xf32> -> vector<16x256xf32>
      %62 = vector.broadcast %23 : vector<1x256xf32> to vector<16x256xf32>
      %63 = arith.addf %61, %62 : vector<16x256xf32>
      %cst_52 = arith.constant 5.000000e-01 : f32
      %64 = vector.broadcast %cst_52 : f32 to vector<16x256xf32>
      %65 = arith.mulf %64, %63 : vector<16x256xf32>
      %cst_53 = arith.constant 0.707106769 : f32
      %66 = vector.broadcast %cst_53 : f32 to vector<16x256xf32>
      %67 = arith.mulf %63, %66 : vector<16x256xf32>
      %68 = math.erf %67 : vector<16x256xf32>
      %cst_54 = arith.constant 1.000000e+00 : f32
      %69 = vector.broadcast %cst_54 : f32 to vector<16x256xf32>
      %70 = arith.addf %69, %68 : vector<16x256xf32>
      %71 = arith.mulf %65, %70 : vector<16x256xf32>
      %72 = arith.truncf %71 : vector<16x256xf32> to vector<16x256xbf16>
      %cst_55 = arith.constant dense<0.000000e+00> : vector<16x128xf32>
      %73 = tpu.matmul %72, %25, %cst_55 {dimension_numbers = #tpu.dot_dimension_numbers<[1], [0], [0], [1], [0, 0, 1, 1], [], []>} : vector<16x256xbf16>, vector<256x128xbf16>, vector<16x128xf32> -> vector<16x128xf32>
      %74 = arith.addf %37, %73 : vector<16x128xf32>
      %75 = vector.broadcast %27 : vector<1x128xf32> to vector<16x128xf32>
      %76 = arith.addf %74, %75 : vector<16x128xf32>
      %77 = arith.index_cast %35 : i32 to index
      %c0_56 = arith.constant 0 : index
      %78 = vector.load %arg19[%77, %c0_56] : memref<32x128xf32, #tpu.memory_space<vmem>>, vector<16x128xf32>
      tpu.vector_store %arg19[%77, %c0_56], %76 {strides = array<i32>} : memref<32x128xf32, #tpu.memory_space<vmem>>, vector<16x128xf32>,
    }
    %c2_i32_41 = arith.constant 2 : i32
    %c1_i32_42 = arith.constant 1 : i32
    %29 = arith.cmpi eq, %arg1, %c1_i32_42 : i32
    %30 = arith.extui %29 : i1 to i32
    %c0_i32_43 = arith.constant 0 : i32
    %31 = arith.cmpi ne, %30, %c0_i32_43 : i32
    scf.if %31 {
      %c0_44 = arith.constant 0 : index
      %c0_45 = arith.constant 0 : index
      %32 = vector.load %arg19[%c0_44, %c0_45] : memref<32x128xf32, #tpu.memory_space<vmem>>, vector<32x128xf32>
      %33 = vector.shape_cast %32 : vector<32x128xf32> to vector<2x16x128xf32>
      %cst = arith.constant dense<0.000000e+00> : vector<2x128xf32>
      %34 = vector.multi_reduction <add>, %33, %cst [1] : vector<2x16x128xf32> to vector<2x128xf32>
      %cst_46 = arith.constant 1.600000e+01 : f32
      %35 = vector.broadcast %cst_46 : f32 to vector<2x128xf32>
      %36 = arith.divf %34, %35 : vector<2x128xf32>
      %c0_47 = arith.constant 0 : index
      %c0_48 = arith.constant 0 : index
      %37 = vector.load %arg17[%c0_47, %c0_48] : memref<128x128xbf16, #tpu.memory_space<vmem>>, vector<128x128xbf16>
      %38 = arith.truncf %36 : vector<2x128xf32> to vector<2x128xbf16>
      %cst_49 = arith.constant dense<0.000000e+00> : vector<2x128xf32>
      %39 = tpu.matmul %38, %37, %cst_49 {dimension_numbers = #tpu.dot_dimension_numbers<[1], [0], [0], [1], [0, 0, 1, 1], [], []>} : vector<2x128xbf16>, vector<128x128xbf16>, vector<2x128xf32> -> vector<2x128xf32>
      %c0_50 = arith.constant 0 : index
      %c0_51 = arith.constant 0 : index
      %40 = vector.load %arg18[%c0_50, %c0_51] : memref<1x128xf32, #tpu.memory_space<vmem>>, vector<1x128xf32>
      %41 = vector.broadcast %40 : vector<1x128xf32> to vector<2x128xf32>
      %42 = arith.addf %39, %41 : vector<2x128xf32>
      %c0_52 = arith.constant 0 : index
      %c0_53 = arith.constant 0 : index
      %c0_54 = arith.constant 0 : index
      %43 = vector.load %arg20[%c0_52, %c0_53, %c0_54] : memref<1x2x128xf32, #tpu.memory_space<vmem>>, vector<1x2x128xf32>
      %44 = vector.shape_cast %43 : vector<1x2x128xf32> to vector<2x128xf32>
      %45 = vector.shape_cast %42 : vector<2x128xf32> to vector<1x2x128xf32>
      tpu.vector_store %arg20[%c0_52, %c0_53, %c0_54], %45 {strides = array<i32>} : memref<1x2x128xf32, #tpu.memory_space<vmem>>, vector<1x2x128xf32>,
    } else {
    }
    return
  }
  func.func @transform_0(%arg0: i32, %arg1: i32) -> (i32, i32, i32) {
    %c0_i32 = arith.constant 0 : i32
    %c0_i32_0 = arith.constant 0 : i32
    %c0_i32_1 = arith.constant 0 : i32
    return %arg0, %c0_i32, %c0_i32_0 : i32, i32, i32
  }
  func.func @transform_1(%arg0: i32, %arg1: i32) -> (i32, i32) {
    %c0_i32 = arith.constant 0 : i32
    %c0_i32_0 = arith.constant 0 : i32
    %c0_i32_1 = arith.constant 0 : i32
    return %c0_i32, %c0_i32_0 : i32, i32
  }
  func.func @transform_2(%arg0: i32, %arg1: i32) -> (i32, i32) {
    %c0_i32 = arith.constant 0 : i32
    %c0_i32_0 = arith.constant 0 : i32
    %c0_i32_1 = arith.constant 0 : i32
    return %c0_i32, %c0_i32_0 : i32, i32
  }
  func.func @transform_3(%arg0: i32, %arg1: i32) -> (i32, i32, i32) {
    %c0_i32 = arith.constant 0 : i32
    %c0_i32_0 = arith.constant 0 : i32
    %c0_i32_1 = arith.constant 0 : i32
    return %arg1, %c0_i32, %c0_i32_0 : i32, i32, i32
  }
  func.func @transform_4(%arg0: i32, %arg1: i32) -> (i32, i32, i32) {
    %c0_i32 = arith.constant 0 : i32
    %c0_i32_0 = arith.constant 0 : i32
    %c0_i32_1 = arith.constant 0 : i32
    return %arg1, %c0_i32, %c0_i32_0 : i32, i32, i32
  }
  func.func @transform_5(%arg0: i32, %arg1: i32) -> (i32, i32, i32) {
    %c0_i32 = arith.constant 0 : i32
    %c0_i32_0 = arith.constant 0 : i32
    %c0_i32_1 = arith.constant 0 : i32
    return %arg1, %c0_i32, %c0_i32_0 : i32, i32, i32
  }
  func.func @transform_6(%arg0: i32, %arg1: i32) -> (i32, i32, i32) {
    %c0_i32 = arith.constant 0 : i32
    %c0_i32_0 = arith.constant 0 : i32
    %c0_i32_1 = arith.constant 0 : i32
    return %arg1, %c0_i32, %c0_i32_0 : i32, i32, i32
  }
  func.func @transform_7(%arg0: i32, %arg1: i32) -> (i32, i32, i32) {
    %c0_i32 = arith.constant 0 : i32
    %c0_i32_0 = arith.constant 0 : i32
    %c0_i32_1 = arith.constant 0 : i32
    return %arg1, %c0_i32, %c0_i32_0 : i32, i32, i32
  }
  func.func @transform_8(%arg0: i32, %arg1: i32) -> (i32, i32, i32) {
    %c0_i32 = arith.constant 0 : i32
    %c0_i32_0 = arith.constant 0 : i32
    %c0_i32_1 = arith.constant 0 : i32
    return %arg1, %c0_i32, %c0_i32_0 : i32, i32, i32
  }
  func.func @transform_9(%arg0: i32, %arg1: i32) -> (i32, i32, i32) {
    %c0_i32 = arith.constant 0 : i32
    %c0_i32_0 = arith.constant 0 : i32
    %c0_i32_1 = arith.constant 0 : i32
    return %arg1, %c0_i32, %c0_i32_0 : i32, i32, i32
  }
  func.func @transform_10(%arg0: i32, %arg1: i32) -> (i32, i32, i32) {
    %c0_i32 = arith.constant 0 : i32
    %c0_i32_0 = arith.constant 0 : i32
    %c0_i32_1 = arith.constant 0 : i32
    return %arg1, %c0_i32, %c0_i32_0 : i32, i32, i32
  }
  func.func @transform_11(%arg0: i32, %arg1: i32) -> (i32, i32, i32) {
    %c0_i32 = arith.constant 0 : i32
    %c0_i32_0 = arith.constant 0 : i32
    %c0_i32_1 = arith.constant 0 : i32
    return %arg1, %c0_i32, %c0_i32_0 : i32, i32, i32
  }
  func.func @transform_12(%arg0: i32, %arg1: i32) -> (i32, i32, i32) {
    %c0_i32 = arith.constant 0 : i32
    %c0_i32_0 = arith.constant 0 : i32
    %c0_i32_1 = arith.constant 0 : i32
    return %arg1, %c0_i32, %c0_i32_0 : i32, i32, i32
  }
  func.func @transform_13(%arg0: i32, %arg1: i32) -> (i32, i32, i32) {
    %c0_i32 = arith.constant 0 : i32
    %c0_i32_0 = arith.constant 0 : i32
    %c0_i32_1 = arith.constant 0 : i32
    return %arg1, %c0_i32, %c0_i32_0 : i32, i32, i32
  }
  func.func @transform_14(%arg0: i32, %arg1: i32) -> (i32, i32, i32) {
    %c0_i32 = arith.constant 0 : i32
    %c0_i32_0 = arith.constant 0 : i32
    %c0_i32_1 = arith.constant 0 : i32
    return %arg1, %c0_i32, %c0_i32_0 : i32, i32, i32
  }
  func.func @transform_15(%arg0: i32, %arg1: i32) -> (i32, i32) {
    %c0_i32 = arith.constant 0 : i32
    %c0_i32_0 = arith.constant 0 : i32
    %c0_i32_1 = arith.constant 0 : i32
    return %c0_i32, %c0_i32_0 : i32, i32
  }
  func.func @transform_16(%arg0: i32, %arg1: i32) -> (i32, i32) {
    %c0_i32 = arith.constant 0 : i32
    %c0_i32_0 = arith.constant 0 : i32
    %c0_i32_1 = arith.constant 0 : i32
    return %c0_i32, %c0_i32_0 : i32, i32
  }
  func.func @transform_17(%arg0: i32, %arg1: i32) -> (i32, i32) {
    %c0_i32 = arith.constant 0 : i32
    %c0_i32_0 = arith.constant 0 : i32
    return %arg0, %c0_i32 : i32, i32
  }
  func.func @transform_18(%arg0: i32, %arg1: i32) -> (i32, i32, i32) {
    %c0_i32 = arith.constant 0 : i32
    %c0_i32_0 = arith.constant 0 : i32
    %c0_i32_1 = arith.constant 0 : i32
    return %arg0, %c0_i32, %c0_i32_0 : i32, i32, i32
  }
}

</mosaic_0001>

<bundles_post_ra>
// kernel: tpu_custom_call.1
= control target key start
LH: loop header
LB: loop body
LE: loop exit
PB: predicated region body
PF: predicated region fallthrough
CT: control target
= control target key end

     0   :  { %s3309_s0 = inlined_call_operand.vmem [shape: bf16[2,16,48], index: 0, kind: input, shape index: {}]   ;;  %s3310_s1 = inlined_call_operand.vmem [shape: bf16[48,128], index: 1, kind: input, shape index: {}]   ;;  %s3311_s2 = inlined_call_operand.vmem [shape: f32[1,128], index: 2, kind: input, shape index: {}]   ;;  %s3312_s3 = inlined_call_operand.vmem [shape: f32[2,1,128], index: 3, kind: input, shape index: {}]   ;;  %s3313_s4 = inlined_call_operand.vmem [shape: f32[2,1,128], index: 4, kind: input, shape index: {}]   ;;  %s3314_s5 = inlined_call_operand.vmem [shape: bf16[2,32,16], index: 5, kind: input, shape index: {}]   ;;  %s3315_s6 = inlined_call_operand.vmem [shape: f32[2,32,1], index: 6, kind: input, shape index: {}]   ;;  %s3316_s7 = inlined_call_operand.vmem [shape: bf16[2,16,32], index: 7, kind: input, shape index: {}]   ;;  %s3317_s8 = inlined_call_operand.vmem [shape: f32[2,16,1], index: 8, kind: input, shape index: {}]   ;;  %s3318_s9 = inlined_call_operand.vmem [shape: f32[2,1,128], index: 9, kind: input, shape index: {}]   ;;  %s3319_s10 = inlined_call_operand.vmem [shape: f32[2,1,128], index: 10, kind: input, shape index: {}]   ;;  %s3320_s11 = inlined_call_operand.hbm [shape: bf16[2,128,256], index: 11, kind: input, shape index: {}]   ;;  %s3321_s12 = inlined_call_operand.vmem [shape: f32[2,1,256], index: 12, kind: input, shape index: {}]   ;;  %s3322_s13 = inlined_call_operand.hbm [shape: bf16[2,256,128], index: 13, kind: input, shape index: {}]   ;;  %s3323_s14 = inlined_call_operand.vmem [shape: f32[2,1,128], index: 14, kind: input, shape index: {}]   ;;  %s3324_s15 = inlined_call_operand.vmem [shape: bf16[128,128], index: 15, kind: input, shape index: {}]   ;;  %s3325_s16 = inlined_call_operand.vmem [shape: f32[1,128], index: 16, kind: input, shape index: {}]   ;;  %s3326_s17 = inlined_call_operand.hbm [shape: f32[32,128], index: 17, kind: output, shape index: {0}]   ;;  %s3327_s18 = inlined_call_operand.hbm [shape: f32[1,2,128], index: 18, kind: output, shape index: {1}]  }
   0x1   :  { %3346 = sst [smem:[#allocation34_spill]] %s3309_s0 }
   0x2   :  { %3347 = sst [smem:[#allocation35_spill]] %s3310_s1 }
   0x3   :  { %3348 = sst [smem:[#allocation36_spill]] %s3311_s2 }
   0x4   :  { %3349 = sst [smem:[#allocation37_spill]] %s3314_s5 }
   0x5   :  { %3350 = sst [smem:[#allocation38_spill]] %s3315_s6 }
   0x6   :  { %3351 = sst [smem:[#allocation39_spill]] %s3320_s11 }
   0x7   :  { %3352 = sst [smem:[#allocation40_spill]] %s3322_s13 }
   0x8   :  { %3353 = sst [smem:[#allocation41_spill]] %s3324_s15 }
   0x9   :  { %3354 = sst [smem:[#allocation42_spill]] %s3325_s16 }
   0xa   :  { %3355 = sst [smem:[#allocation43_spill]] %s3326_s17 }
   0xb   :  { %3356 = sst [smem:[#allocation44_spill]] %s3327_s18 }
   0xc   :  { %24 = vsyncpa [#allocation3], 0 }
   0xd   :  { %26 = vsyncpa [#allocation3 + $0x1], 0 }
   0xe   :  { %27 = vsyncpa [#allocation6], 0 }
   0xf   :  { %29 = vsyncpa [#allocation6 + $0x1], 0 }
  0x10   :  { %30 = vsyncpa [#allocation4], 0 }
  0x11   :  { %31 = vsyncpa [#allocation9], 0  ;;  %s2622_s27 = smov 0   ;;  %s2624_s28 = smov 0  }
  0x12   :  { %s2626_s29 = smov 0   ;;  %s2628_s30 = smov 0  }
  0x13   :  { %s2630_s0 = smov 0   ;;  %s2632_s19 = smov 0  }
  0x14 LB: > { %3357 = sst [smem:[#allocation14_spill]] %s2485_s28  ;;  %s3332_s1 = sadd.s32 4294967295, %s2501_s19   ;;  %s2501_s19 = sphi %s2632_s19, %s37_s19   ;;  %s2497_s0 = sphi %s2630_s0, %s3421_s0   ;;  %s2493_s30 = sphi %s2628_s30, %s3420_s30   ;;  %s2489_s29 = sphi %s2626_s29, %s3419_s29   ;;  %s2485_s28 = sphi %s2624_s28, %s3418_s28   ;;  %s2481_s27 = sphi %s2622_s27, %s3417_s27  }
  0x15   : > { %3358 = sst [smem:[#allocation15_spill]] %s2489_s29  ;;  %s46_s20 = sadd.s32 1, %s2497_s0 }
  0x16   : > { %3359 = sst [smem:[#allocation16_spill]] %s2497_s0  ;;  %p47_p0 = scmp.ge.s32.totalorder %s46_s20, 2 }
  0x17   : > { %3360 = sst [smem:[#allocation17_spill]] %s2501_s19  ;;  %s332_s21 = sadd.s32 1, %s2489_s29 }
  0x18   : > { %p339_p1 = scmp.ne.s32.totalorder %s2489_s29, %s2485_s28  ;;  %p340_p2 = scmp.eq.s32.totalorder %s2501_s19, 0 }
  0x19   : > { %s3423_s20 = smov (%p47_p0, %s46_s20), 0  ;;  %p345_p4 = scmp.ne.s32.totalorder %s2485_s28, %s2481_s27 }
  0x1a   : > { %3361 = sst [smem:[#allocation18_spill]] %s3423_s20  ;;  %p2658_p3 = por %p340_p2, %p339_p1 }
  0x1b   : > { %s329_s2 = ssub.s32 %s2497_s0, %s3423_s20  ;;  %p346_p5 = scmp.eq.s32.totalorder %s3332_s1, 0 }
  0x1c   : > { %p330_p6 = scmp.eq.s32.totalorder %s329_s2, 0  ;;  %p2197_p8 = scmp.lt.s32.totalorder %s2501_s19, 2 }
  0x1d   : > { %p2667_p7 = por %p346_p5, %p345_p4  ;;  %s2676_s25 = sand.u32 1, %s2489_s29  }
  0x1e   : > { %s2673_s24 = scalar_select %p330_p6, %s2489_s29, %s332_s21  }
  0x1f   : > { %s3363_s23 = scalar_select %p2667_p7, 1, 0 }
  0x20   : > { %3364 = sst [smem:[#allocation19_spill]] %s2673_s24  ;;  %s3335_s26 = sshll.u32 %s2497_s0, 11 }
  0x21   : > { %s3334_s18 = sshll.u32 %s2676_s25, 7  ;;  %s3365_s11 = sld [smem:[#allocation39_spill]] }
  0x22   : > { %s623_s21 = scalar_lea.vmem [#allocation2], %s3334_s18  ;;  %p2691_p9 = pnand %p2197_p8, %p2658_p3 }
  0x23   : > { %s630_s2 = sshll.u32 %s623_s21, 4  ;;  %s2695_s2 = int_to_ptr.vmem [resolvable:$true] %s630_s2 }
  0x24   : > { %p2321_p11 = pneg %p2691_p9 }
  0x27   : > { %s2685_s1 = scalar_lea.hbm %s3365_s11, %s3335_s26  ;;  %s2324_s22 = scalar_lea.hbm %s3365_s11, 4096 }
  0x28   : > { %s2319_s20 = scalar_lea.hbm %s2685_s1, 2048  ;;  %p2325_p0 = scmp.lt.u32.totalorder %s2685_s1, %s3365_s11 }
  0x29   : > { %p2320_p10 = scmp.ne.s32.totalorder %s2685_s1, %s2319_s20  ;;  %p2326_p1 = scmp.lt.u32.totalorder %s2324_s22, %s2319_s20 }
  0x2a   : > { %p2328_p3 = scmp.lt.u32.totalorder %s2319_s20, %s2685_s1 }
  0x2b   : > { %p2322_p12 = pnand %p2321_p11, %p2320_p10  ;;  %p2327_p2 = por %p2326_p1, %p2325_p0 }
  0x2d   : > { %p2323_p13 = pneg %p2322_p12  ;;  %p2329_p4 = por %p2328_p3, %p2327_p2 }
  0x2f   : > { %p2330_p5 = pnand %p2329_p4, %p2323_p13 }
  0x31   : > { %2333 = shalt.err (!%p2330_p5)
}
  0x32   : > { %s2334_s29 = scalar_lea.vmem %s2695_s2, 2048  ;;  %s2511_s27 = smov [#allocation2]  }
  0x33   : > { %p2335_p6 = scmp.ne.s32.totalorder %s2695_s2, %s2334_s29  ;;  %s2339_s21 = sshll.u32 %s2511_s27, 4  ;;  %s2340_s21 = int_to_ptr.vmem [resolvable:$false] %s2339_s21 }
  0x34   : > { %s2341_s18 = scalar_lea.vmem %s2340_s21, 4096  ;;  %p2342_p12 = scmp.lt.s32.totalorder %s2695_s2, %s2340_s21 }
  0x35   : > { %p2337_p8 = pnand %p2335_p6, %p2321_p11  ;;  %p2343_p0 = scmp.lt.s32.totalorder %s2341_s18, %s2334_s29 }
  0x37   : > { %p2338_p10 = pneg %p2337_p8  ;;  %p2344_p1 = por %p2343_p0, %p2342_p12 }
  0x39   : > { %p2345_p2 = pnand %p2344_p1, %p2338_p10 }
  0x3b   : > { %2348 = shalt.err (!%p2345_p2)
}
  0x3c   : > { %s2512_s26 = smov 128   ;;  %s2513_s20 = smov 8  }
  0x3d   : > { %s3367_s22 = scalar_lea.sflag [#allocation3], %s2676_s25  ;;  %p2004_p13 = scmp.ge.s32.totalorder %s2501_s19, 1 }
  0x3e   : > { %2193 = dma.hbm_to_vmem [thread:$0]  (!%p2691_p9), %s2685_s1, 2048, %s2695_s2, %s3367_s22, %s2512_s26, %s2512_s26, %s2513_s20  }
  0x3f   : > { %p672_p3 = scmp.lt.s32.totalorder %s2501_s19, 3  ;;  %s3369_s27 = sshll.u32 %s2497_s0, 11 }
  0x40   : > { %s3370_s13 = sld [smem:[#allocation40_spill]]  ;;  %s3371_s17 = sshll.u32 %s2676_s25, 7 }
  0x41   : > { %p2727_p4 = pnand %p2004_p13, %p672_p3  ;;  %s651_s16 = scalar_lea.vmem [#allocation5], %s3371_s17 }
  0x42   : > { %s658_s15 = sshll.u32 %s651_s16, 4  ;;  %s648_s1 = scalar_lea.sflag [#allocation6], %s2676_s25  ;;  %s2740_s15 = int_to_ptr.vmem [resolvable:$true] %s658_s15 }
  0x46   : > { %s2736_s11 = scalar_lea.hbm %s3370_s13, %s3369_s27  ;;  %s2354_s22 = scalar_lea.hbm %s3370_s13, 4096 }
  0x47   : > { %s2349_s2 = scalar_lea.hbm %s2736_s11, 2048  ;;  %p2355_p10 = scmp.lt.u32.totalorder %s2736_s11, %s3370_s13 }
  0x48   : > { %p2350_p5 = scmp.ne.s32.totalorder %s2736_s11, %s2349_s2  ;;  %p2356_p12 = scmp.lt.u32.totalorder %s2354_s22, %s2349_s2 }
  0x49   : > { %p2358_p1 = scmp.lt.u32.totalorder %s2349_s2, %s2736_s11 }
  0x4a   : > { %p2352_p6 = pnand %p2350_p5, %p2321_p11  ;;  %p2357_p0 = por %p2356_p12, %p2355_p10 }
  0x4c   : > { %p2353_p8 = pneg %p2352_p6  ;;  %p2359_p2 = por %p2358_p1, %p2357_p0 }
  0x4e   : > { %p2360_p13 = pnand %p2359_p2, %p2353_p8 }
  0x50   : > { %2363 = shalt.err (!%p2360_p13)
}
  0x51   : > { %s2364_s16 = scalar_lea.vmem %s2740_s15, 2048  ;;  %s2514_s17 = smov [#allocation5]  }
  0x52   : > { %p2365_p3 = scmp.ne.s32.totalorder %s2740_s15, %s2364_s16  ;;  %s2369_s18 = sshll.u32 %s2514_s17, 4  ;;  %s2370_s18 = int_to_ptr.vmem [resolvable:$false] %s2369_s18 }
  0x53   : > { %s2371_s26 = scalar_lea.vmem %s2370_s18, 4096  ;;  %p2372_p7 = scmp.lt.s32.totalorder %s2740_s15, %s2370_s18 }
  0x54   : > { %p2367_p5 = pnand %p2365_p3, %p2321_p11  ;;  %p2373_p10 = scmp.lt.s32.totalorder %s2371_s26, %s2364_s16 }
  0x56   : > { %p2368_p6 = pneg %p2367_p5  ;;  %p2374_p12 = por %p2373_p10, %p2372_p7 }
  0x58   : > { %p2375_p0 = pnand %p2374_p12, %p2368_p6 }
  0x5a   : > { %2378 = shalt.err (!%p2375_p0)
}
  0x5b   : > { %s2515_s2 = smov 64   ;;  %s2516_s20 = smov 4  }
  0x5c   : > { %2196 = dma.hbm_to_vmem [thread:$0]  (!%p2691_p9), %s2736_s11, 2048, %s2740_s15, %s648_s1, %s2515_s2, %s2515_s2, %s2516_s20  }
  0x5d   : > { %676 = sbr.rel (%p2727_p4) target bundleno = 2241 (0x8c1), region = 88 }
  0x64   : > { %s678_s22 = sand.u32 1, %s2485_s28   ;;  %p3372_p7 = scmp.ne.s32.totalorder %s3363_s23, 0 }
  0x65   : > { %s2005_s27 = sshll.u32 %s678_s22, 7  ;;  %s679_s21 = scalar_lea.sflag [#allocation3], %s678_s22 }
  0x66   : > { %s2771_s16 = scalar_lea.vmem [#allocation2], %s2005_s27 }
  0x67   : > { %2464 = dma.done.wait (%p3372_p7), %s679_s21, 2048  }
  0x68   : > { %2466 = vsyncadd (%p3372_p7), %s679_s21, 4294965248  ;;  %s688_s17 = scalar_lea.sflag [#allocation6], %s678_s22  ;;  %s2777_s24 = scalar_lea.vmem [#allocation5], %s2005_s27 }
  0x69   : > { %2468 = dma.done.wait (%p3372_p7), %s688_s17, 2048  }
  0x6a   : > { %2470 = vsyncadd (%p3372_p7), %s688_s17, 4294965248  ;;  %p796_p9 = scmp.lt.s32.totalorder %s2493_s30, 1  ;;  %s3373_s5 = sld [smem:[#allocation37_spill]] }
  0x6b   : > { %s3374_s6 = sld [smem:[#allocation38_spill]]  ;;  %p2016_p11 = scmp.ne.s32.totalorder %s2493_s30, 0 }
  0x6c   : > { %s2785_s11 = scalar_select %p796_p9, %s2493_s30, 1 }
  0x6d   : > { %840 = sbr.rel (%p2016_p11) target bundleno = 346 (0x15a), region = 100  ;;  %s3375_s1 = sld [smem:[#allocation35_spill]] (!%p2016_p11)  ;;  %vm886_vm0 = vcmask (!%p2016_p11), 392192  }
  0x6e   : > { %s2088_s26 = sshll.u32 %s2785_s11, 4  ;;  %s2089_s2 = sshll.u32 %s2785_s11, 5 }
  0x6f   : > { %s2090_s25 = sshll.u32 %s2785_s11, 3  ;;  %s2811_s29 = scalar_lea.vmem %s3317_s8, %s2088_s26 }
  0x70   : > { %s2800_s27 = scalar_lea.vmem %s3373_s5, %s2088_s26  ;;  %s2816_s18 = scalar_lea.vmem %s3316_s7, %s2090_s25 }
  0x71   : > { %s2805_s15 = scalar_lea.vmem %s3374_s6, %s2089_s2  ;;  %s824_s22 = scalar_lea.vmem %s3318_s9, %s2785_s11 }
  0x72   : > { %s827_s2 = scalar_lea.vmem %s3319_s10, %s2785_s11  ;;  %s2015_s21 = sshll.u32 %s2785_s11, 1 }
  0x73   : > { %s2830_s13 = scalar_lea.vmem %s3321_s12, %s2015_s21  ;;  %s834_s23 = scalar_lea.vmem %s3323_s14, %s2785_s11  ;;  %v2280_v0 = vld [vmem:[%s3375_s1] sm:$0xff] (!%p2016_p11)   ;;  %v2281_v1 = vld [vmem:[%s3375_s1 + $0x8] sm:$0xff] (!%p2016_p11)   ;;  %v2282_v3 = vld [vmem:[%s3375_s1 + $0x10] sm:$0xff] (!%p2016_p11)  }
  0x74   : > { %2134 = vmatprep.subr.bf16.mxu0 %v2280_v0  ;;  %s3376_s21 = sld [smem:[#allocation34_spill]]  ;;  %s3377_s5 = sld [smem:[#allocation36_spill]] }
  0x75   : > { %2135 = vmatpush3.bf16.msra.mxu0 %v2280_v0 }
  0x76   : > { %2136 = vmatprep.subr.bf16.mxu0 %v2281_v1 }
  0x79   : > { %2137 = vmatpush3.bf16.msra.mxu0 %v2281_v1 }
  0x7a   : > { %v2283_v2 = vld [vmem:[%s3376_s21] sm:$0xff]   ;;  %2138 = vmatprep.subr.bf16.mxu0 %v2282_v3  ;;  %v2284_v4 = vld [vmem:[%s3376_s21 + $0x8] sm:$0xff]  }
  0x7b   : > { %2140 = vmatprep.mubr.msk.bf16.mxu0 %vm886_vm0, %v2283_v2  ;;  %v2017_v5 = vld [vmem:[%s3377_s5] ss:$0 sm:$0xff] }
  0x7d   : > { %2139 = vmatpush3.bf16.msra.mxu0 %v2282_v3 }
  0x80   : > { %2141 = vmatmul.mubr.msk.bf16.vlgmr.msra.gmra.mrb[0].mxu0 %vm886_vm0, %v2284_v4 }
 0x153   : > { %v2142_v6 = vpop.f32.mrb[0].mxu0 }
 0x154   : > { %v936_v7 = vadd.f32 %v2142_v6, %v2017_v5  ;;  %v927_v8 = vpop.f32.mrb[1].mxu0 }
 0x155   : > { %v928_v9 = vadd.f32 %v2017_v5, %v927_v8  ;;  %v2143_v10 = vpop.f32.mrb[2].mxu0 }
 0x156   : > { %944 = vst [vmem:[#allocation7 + $0x10] sm:$0xff] %v936_v7  ;;  %v939_v11 = vadd.f32 %v2143_v10, %v2017_v5  ;;  %v930_v12 = vpop.f32.mrb[3].mxu0 }
 0x157   : > { %942 = vst [vmem:[#allocation7] sm:$0xff] %v928_v9  ;;  %v931_v13 = vadd.f32 %v2017_v5, %v930_v12 }
 0x158   : > { %945 = vst [vmem:[#allocation7 + $0x18] sm:$0xff] %v939_v11 }
 0x159   : > { %943 = vst [vmem:[#allocation7 + $0x8] sm:$0xff] %v931_v13 }
 0x15a PF: > { %s3378_s17 = scalar_lea.vmem %s3312_s3, %s2785_s11  ;;  %s3379_s25 = scalar_lea.vmem %s3313_s4, %s2785_s11  ;;  %v2870_v16 = vld [vmem:[%s2800_s27] sm:$0xf]  ;;  %v2873_v17 = vld [vmem:[%s2800_s27 + $0x4] sm:$0xf]  ;;  %v2876_v18 = vld [vmem:[%s2800_s27 + $0x8] sm:$0xf] }
 0x15b   : > { %v2860_v14 = vld [vmem:[%s3378_s17] ss:$0 sm:$0xff]  ;;  %v2879_v19 = vld [vmem:[%s2800_s27 + $0xc] sm:$0xf]  ;;  %v2888_v22 = vld [vmem:[%s2805_s15 + $0x10] sm:$0xff]  ;;  %s2905_s28 = smov 0  }
 0x15c   : > { %v2867_v15 = vld [vmem:[%s3379_s25] ss:$0 sm:$0xff]  ;;  %v2885_v21 = vld [vmem:[%s2805_s15 + $0x8] sm:$0xff]  ;;  %v2891_v23 = vld [vmem:[%s2805_s15 + $0x18] sm:$0xff] }
 0x15d   : > { %v2882_v20 = vld [vmem:[%s2805_s15] sm:$0xff]  ;;  %v2903_v27 = vld [vmem:[%s2811_s29 + $0x8] sm:$0xff] }
 0x15e   : > { %v2894_v24 = vld [vmem:[%s2816_s18] sm:$0xf]  ;;  %v2897_v25 = vld [vmem:[%s2816_s18 + $0x4] sm:$0xf] }
 0x15f   : > { %v2900_v26 = vld [vmem:[%s2811_s29] sm:$0xff] }
 0x160 LB: >> { %s2025_s27 = sshll.u32 %s2505_s28, 4  ;;  %v2028_v38 = vcombine.low %v2870_v16, %v2873_v17  ;;  %vm1040_vm1 = vcmask 130048   ;;  %v2517_v39 = vmov 0   ;;  %v2029_v55 = vcombine.low %v2876_v18, %v2879_v19  ;;  %s965_s28 = sadd.s32 1, %s2505_s28   ;;  %s2505_s28 = sphi %s2905_s28, %s965_s28  }
 0x161   : >> { %s2911_s20 = scalar_lea.vmem [#allocation7], %s2025_s27  ;;  %2286 = vset.pattern.permute.xlu1 %v2517_v39  ;;  %2285 = vset.pattern.permute.xlu0 %v2517_v39  ;;  %v2518_v56 = vmov 0.0   ;;  %vm2519_vm2 = vmmov 0   ;;  %vm1123_vm3 = vcmask 261120   ;;  %p962_p4 = scmp.ge.s32.totalorder %s965_s28, 2  }
 0x162   : >> { %v2914_v28 = vld [vmem:[%s2911_s20] sm:$0xff]  ;;  %v2918_v29 = vld [vmem:[%s2911_s20 + $0x8] sm:$0xff]  ;;  %2146 = vmatprep.mubr.msk.bf16.mxu0 %vm1040_vm1, %v2028_v38  ;;  %2150 = vmatprep.subr.bf16.mxu1 %v2518_v56  ;;  %v2969_v18 = vld [vmem:[%s2771_s16 + $0x10] sm:$0xff] (%p962_p4) }
 0x163   : >> { %970 = vadd.xlane.f32.xlu0 %v2914_v28  ;;  %2154 = vmatprep.mubr.msk.bf16.mxu1 %vm2519_vm2, %v2518_v56  ;;  %v2963_v16 = vld [vmem:[%s2771_s16] sm:$0xff] (%p962_p4)  ;;  %v2966_v17 = vld [vmem:[%s2771_s16 + $0x8] sm:$0xff] (%p962_p4)  ;;  %3382 = vst [vmem:[#allocation22_spill] sm:$0xff] (%p962_p4), %v2969_v18  ;;  %v2972_v19 = vld [vmem:[%s2771_s16 + $0x18] sm:$0xff] (%p962_p4) }
 0x164   : > { %3380 = vst [vmem:[#allocation20_spill] sm:$0xff] (%p962_p4), %v2963_v16  ;;  %3381 = vst [vmem:[#allocation21_spill] sm:$0xff] (%p962_p4), %v2966_v17 }
 0x167   : >> { %972 = vadd.xlane.f32.xlu0 %v2918_v29 }
 0x17d   : >> { %1012 = vperm.xlu0 %2285, %v2882_v20   ;;  %v2975_v20 = vld [vmem:[%s2771_s16 + $0x20] sm:$0xff] (%p962_p4) }
 0x1f0   : >> { %v971_v30 = vpop.xlane.xlu0 %970 }
 0x1f1   : >> { %v975_v31 = vmul.f32 0.0078125, %v971_v30 }
 0x1f3   : >> { %v977_v32 = vsub.f32 %v2914_v28, %v975_v31 }
 0x1f4   : >> { %v973_v33 = vpop.xlane.xlu0 %972 }
 0x1f5   : >> { %v976_v34 = vmul.f32 0.0078125, %v973_v33  ;;  %v979_v35 = vmul.f32 %v977_v32, %v977_v32 }
 0x1f7   : >> { %v978_v36 = vsub.f32 %v2918_v29, %v976_v34  ;;  %981 = vadd.xlane.f32.xlu1 %v979_v35 }
 0x1f9   : >> { %v980_v37 = vmul.f32 %v978_v36, %v978_v36 }
 0x1fb   : >> { %983 = vadd.xlane.f32.xlu1 %v980_v37 }
 0x1fc   : >> { %v1013_v59 = vpop.permute.xlu0 %1012 }
 0x20c   : >> { %1017 = vperm.xlu1 %2286, %v2885_v21   ;;  %v2978_v21 = vld [vmem:[%s2771_s16 + $0x28] sm:$0xff] (%p962_p4) }
 0x210   : >> { %1022 = vperm.xlu1 %2286, %v2888_v22   ;;  %v2981_v22 = vld [vmem:[%s2771_s16 + $0x30] sm:$0xff] (%p962_p4) }
 0x214   : >> { %1027 = vperm.xlu1 %2286, %v2891_v23   ;;  %v2984_v23 = vld [vmem:[%s2771_s16 + $0x38] sm:$0xff] (%p962_p4) }
 0x218   : >> { %1172 = vperm.xlu1 %2286, %v2900_v26   ;;  %v2993_v26 = vld [vmem:[%s2771_s16 + $0x50] sm:$0xff] (%p962_p4) }
 0x21c   : >> { %1177 = vperm.xlu1 %2286, %v2903_v27   ;;  %v2996_v27 = vld [vmem:[%s2771_s16 + $0x58] sm:$0xff] (%p962_p4) }
 0x284   : >> { %v982_v40 = vpop.xlane.xlu1 %981 }
 0x285   : >> { %v985_v41 = vmul.f32 0.0078125, %v982_v40 }
 0x287   : >> { %v987_v42 = vadd.f32 1e-05, %v985_v41 }
 0x288   : >> { %v984_v43 = vpop.xlane.xlu1 %983 }
 0x289   : >> { %2287 = vrsqrt.f32 %v987_v42  ;;  %v986_v44 = vmul.f32 0.0078125, %v984_v43  ;;  %v2032_v43 = vcombine.low %v2894_v24, %v2897_v25  ;;  %v2987_v24 = vld [vmem:[%s2771_s16 + $0x40] sm:$0xff] (%p962_p4)  ;;  %v2990_v25 = vld [vmem:[%s2771_s16 + $0x48] sm:$0xff] (%p962_p4) }
 0x28b   : >> { %v988_v45 = vadd.f32 1e-05, %v986_v44 }
 0x28c   : >> { %v1018_v57 = vpop.permute.xlu1 %1017 }
 0x28d   : >> { %2289 = vrsqrt.f32 %v988_v45 }
 0x290   : >> { %v1023_v58 = vpop.permute.xlu1 %1022 }
 0x293   : >> { %v2288_v46 = vpop.eup %2287 }
 0x294   : >> { %v991_v47 = vmul.f32 %v2288_v46, %v977_v32  ;;  %v1028_v63 = vpop.permute.xlu1 %1027 }
 0x296   : >> { %v999_v50 = vmul.f32 %v2860_v14, %v991_v47 }
 0x297   : >> { %v2290_v48 = vpop.eup %2289 }
 0x298   : >> { %v992_v49 = vmul.f32 %v2290_v48, %v978_v36  ;;  %v1007_v52 = vadd.f32 %v2867_v15, %v999_v50  ;;  %v1173_v44 = vpop.permute.xlu1 %1172 }
 0x29a   : >> { %v1000_v51 = vmul.f32 %v2860_v14, %v992_v49  ;;  %v2953_v14 = vld [vmem:[%s824_s22] ss:$0 sm:$0xff] (%p962_p4) }
 0x29c   : >> { %v1008_v53 = vadd.f32 %v2867_v15, %v1000_v51  ;;  %v2960_v15 = vld [vmem:[%s827_s2] ss:$0 sm:$0xff] (%p962_p4)  ;;  %s3116_s2 = smov (%p962_p4), 0  }
 0x29e   : >> { %v1009_v54 = vpack.c.bf16 %v1008_v53, %v1007_v52  ;;  %v1178_v52 = vpop.permute.xlu1 %1177 }
 0x2a0   : >> { %2144 = vmatprep.subr.bf16.mxu0 %v1009_v54 }
 0x2a1   : >> { %2145 = vmatpush3.bf16.msra.mxu0 %v1009_v54  ;;  %v3005_v54 = vld [vmem:[%s2771_s16 + $0x70] sm:$0xff] (%p962_p4) }
 0x2a4   : >> { %2147 = vmatmul.mubr.msk.bf16.vlgmr.msra.gmra.mrb[0].mxu0 %vm1040_vm1, %v2029_v55  ;;  %v3008_v55 = vld [vmem:[%s2771_s16 + $0x78] sm:$0xff] (%p962_p4) }
 0x377   : >> { %v2148_v60 = vpop.f32.mrb[0].mxu0 }
 0x378   : >> { %v1090_v61 = vadd.f32 %v2148_v60, %v1023_v58  ;;  %v1081_v62 = vpop.f32.mrb[1].mxu0  ;;  %v3017_v58 = vld [vmem:[%s2777_s24 + $0x4] sm:$0xf] (%p962_p4)  ;;  %v3023_v60 = vld [vmem:[%s2777_s24 + $0xc] sm:$0xf] (%p962_p4) }
 0x379   : >> { %v1082_v0 = vadd.f32 %v1081_v62, %v1013_v59  ;;  %v2149_v1 = vpop.f32.mrb[2].mxu0  ;;  %v3020_v59 = vld [vmem:[%s2777_s24 + $0x8] sm:$0xf] (%p962_p4)  ;;  %v3029_v62 = vld [vmem:[%s2777_s24 + $0x14] sm:$0xf] (%p962_p4) }
 0x37a   : >> { %v1102_v2 = vmul.f32 0.70710677, %v1090_v61  ;;  %v1093_v3 = vadd.f32 %v2149_v1, %v1028_v63  ;;  %v1084_v4 = vpop.f32.mrb[3].mxu0  ;;  %v1098_v31 = vmul.f32 0.5, %v1090_v61  ;;  %v3026_v61 = vld [vmem:[%s2777_s24 + $0x10] sm:$0xf] (%p962_p4) }
 0x37b   : >> { %v1100_v5 = vmul.f32 0.70710677, %v1082_v0  ;;  %v1085_v6 = vadd.f32 %v1084_v4, %v1018_v57  ;;  %v1096_v34 = vmul.f32 0.5, %v1082_v0  ;;  %v3014_v57 = vld [vmem:[%s2777_s24] sm:$0xf] (%p962_p4) }
 0x37c   : >> { %2291 = verf.f32 %v1102_v2  ;;  %v1103_v7 = vmul.f32 0.70710677, %v1093_v3  ;;  %v1099_v32 = vmul.f32 0.5, %v1093_v3  ;;  %v3032_v63 = vld [vmem:[%s2777_s24 + $0x18] sm:$0xf] (%p962_p4) }
 0x37d   : >> { %2293 = verf.f32 %v1100_v5  ;;  %v1101_v8 = vmul.f32 0.70710677, %v1085_v6  ;;  %v1097_v35 = vmul.f32 0.5, %v1085_v6  ;;  %v3035_v0 = vld [vmem:[%s2777_s24 + $0x1c] sm:$0xf] (%p962_p4) }
 0x37e   : >> { %2295 = verf.f32 %v1103_v7  ;;  %3383 = vst [vmem:[#allocation23_spill] sm:$0xff] (%p962_p4), %v3035_v0  ;;  %v3038_v1 = vld [vmem:[%s2777_s24 + $0x20] sm:$0xf] (%p962_p4)  ;;  %v3041_v2 = vld [vmem:[%s2777_s24 + $0x24] sm:$0xf] (%p962_p4) }
 0x37f   : >> { %2297 = verf.f32 %v1101_v8  ;;  %3384 = vst [vmem:[#allocation24_spill] sm:$0xff] (%p962_p4), %v3038_v1  ;;  %3385 = vst [vmem:[#allocation25_spill] sm:$0xff] (%p962_p4), %v3041_v2  ;;  %v3044_v3 = vld [vmem:[%s2777_s24 + $0x28] sm:$0xf] (%p962_p4)  ;;  %v3047_v4 = vld [vmem:[%s2777_s24 + $0x2c] sm:$0xf] (%p962_p4) }
 0x380   : > { %3386 = vst [vmem:[#allocation26_spill] sm:$0xff] (%p962_p4), %v3044_v3  ;;  %3387 = vst [vmem:[#allocation27_spill] sm:$0xff] (%p962_p4), %v3047_v4  ;;  %v3050_v5 = vld [vmem:[%s2777_s24 + $0x30] sm:$0xf] (%p962_p4)  ;;  %v3053_v6 = vld [vmem:[%s2777_s24 + $0x34] sm:$0xf] (%p962_p4) }
 0x381   : > { %3388 = vst [vmem:[#allocation28_spill] sm:$0xff] (%p962_p4), %v3050_v5  ;;  %3389 = vst [vmem:[#allocation29_spill] sm:$0xff] (%p962_p4), %v3053_v6  ;;  %v3056_v7 = vld [vmem:[%s2777_s24 + $0x38] sm:$0xf] (%p962_p4)  ;;  %v3059_v8 = vld [vmem:[%s2777_s24 + $0x3c] sm:$0xf] (%p962_p4) }
 0x386   : >> { %v2292_v9 = vpop.eup %2291 }
 0x387   : >> { %v2294_v10 = vpop.eup %2293  ;;  %v1110_v11 = vadd.f32 1.0, %v2292_v9  ;;  %v3062_v9 = vld [vmem:[%s2777_s24 + $0x40] sm:$0xf] (%p962_p4) }
 0x388   : >> { %v2296_v12 = vpop.eup %2295  ;;  %v1108_v13 = vadd.f32 1.0, %v2294_v10  ;;  %3390 = vst [vmem:[#allocation30_spill] sm:$0xff] (%p962_p4), %v3062_v9  ;;  %v3065_v10 = vld [vmem:[%s2777_s24 + $0x44] sm:$0xf] (%p962_p4) }
 0x389   : >> { %v2298_v30 = vpop.eup %2297  ;;  %v1111_v33 = vadd.f32 1.0, %v2296_v12  ;;  %v1114_v37 = vmul.f32 %v1110_v11, %v1098_v31  ;;  %3391 = vst [vmem:[#allocation31_spill] sm:$0xff] (%p962_p4), %v3065_v10  ;;  %v3068_v11 = vld [vmem:[%s2777_s24 + $0x48] sm:$0xf] (%p962_p4)  ;;  %v3071_v12 = vld [vmem:[%s2777_s24 + $0x4c] sm:$0xf] (%p962_p4) }
 0x38a   : >> { %v1109_v36 = vadd.f32 1.0, %v2298_v30  ;;  %v1112_v39 = vmul.f32 %v1108_v13, %v1096_v34  ;;  %3392 = vst [vmem:[#allocation32_spill] sm:$0xff] (%p962_p4), %v3068_v11  ;;  %v3074_v13 = vld [vmem:[%s2777_s24 + $0x50] sm:$0xf] (%p962_p4)  ;;  %v3077_v30 = vld [vmem:[%s2777_s24 + $0x54] sm:$0xf] (%p962_p4) }
 0x38b   : >> { %v1115_v38 = vmul.f32 %v1111_v33, %v1099_v32  ;;  %v3080_v31 = vld [vmem:[%s2777_s24 + $0x58] sm:$0xf] (%p962_p4)  ;;  %v3083_v32 = vld [vmem:[%s2777_s24 + $0x5c] sm:$0xf] (%p962_p4)  ;;  %v3086_v33 = vld [vmem:[%s2777_s24 + $0x60] sm:$0xf] (%p962_p4) }
 0x38c   : >> { %v1113_v40 = vmul.f32 %v1109_v36, %v1097_v35  ;;  %v3089_v34 = vld [vmem:[%s2777_s24 + $0x64] sm:$0xf] (%p962_p4)  ;;  %v3092_v35 = vld [vmem:[%s2777_s24 + $0x68] sm:$0xf] (%p962_p4)  ;;  %v3095_v36 = vld [vmem:[%s2777_s24 + $0x6c] sm:$0xf] (%p962_p4) }
 0x38d   : >> { %v1117_v41 = vpack.c.bf16 %v1115_v38, %v1114_v37  ;;  %v3098_v37 = vld [vmem:[%s2777_s24 + $0x70] sm:$0xf] (%p962_p4)  ;;  %v3101_v38 = vld [vmem:[%s2777_s24 + $0x74] sm:$0xf] (%p962_p4) }
 0x38e   : >> { %v1116_v42 = vpack.c.bf16 %v1113_v40, %v1112_v39  ;;  %v3104_v39 = vld [vmem:[%s2777_s24 + $0x78] sm:$0xf] (%p962_p4)  ;;  %v3107_v40 = vld [vmem:[%s2777_s24 + $0x7c] sm:$0xf] (%p962_p4) }
 0x390   : >> { %2151 = vmatpush3.bf16.msra.mxu1 %v1116_v42 }
 0x391   : >> { %2152 = vmatprep.subr.bf16.mxu1 %v2518_v56  ;;  %v3011_v56 = vld [vmem:[%s2830_s13] sm:$0x3] (%p962_p4) }
 0x394   : >> { %2153 = vmatpush3.bf16.msra.mxu1 %v1117_v41  ;;  %v3114_v41 = vld [vmem:[%s834_s23] ss:$0 sm:$0xff] (%p962_p4) }
 0x395   : > { %3393 = vst [vmem:[#allocation33_spill] sm:$0xff] (%p962_p4), %v3114_v41 }
 0x397   : >> { %2155 = vmatmul.mubr.msk.bf16.vlgmr.msra.gmra.mrb[0].mxu1 %vm1123_vm3, %v2032_v43 }
 0x46a   : >> { %v1161_v45 = vpop.f32.mrb[0].mxu1 }
 0x46b   : >> { %v1168_v46 = vadd.f32 %v1161_v45, %v2914_v28  ;;  %v2156_v47 = vpop.f32.mrb[1].mxu1  ;;  %964 = sbr.rel (!%p962_p4) target bundleno = 352 (0x160), region = 205  ;;  %v2999_v28 = vld [vmem:[%s2771_s16 + $0x60] sm:$0xff] (%p962_p4) }
 0x46c   : >> { %v1164_v48 = vpop.f32.mrb[2].mxu1 }
 0x46d   : >> { %v1180_v49 = vadd.f32 %v1173_v44, %v1168_v46  ;;  %v1169_v50 = vadd.f32 %v1164_v48, %v2918_v29  ;;  %v2157_v51 = vpop.f32.mrb[3].mxu1  ;;  %v3002_v29 = vld [vmem:[%s2771_s16 + $0x68] sm:$0xff] (%p962_p4) }
 0x46f   : >> { %1182 = vst [vmem:[%s2911_s20] sm:$0xff] %v1180_v49  ;;  %v1181_v53 = vadd.f32 %v1178_v52, %v1169_v50 }
 0x471   : >> { %1183 = vst [vmem:[%s2911_s20 + $0x8] sm:$0xff] %v1181_v53 }
 0x472 LB: >> { %v3394_v18 = vld [vmem:[#allocation22_spill] sm:$0xff]  ;;  %v3395_v17 = vld [vmem:[#allocation21_spill] sm:$0xff]  ;;  %v3396_v16 = vld [vmem:[#allocation20_spill] sm:$0xff]  ;;  %s2034_s13 = sshll.u32 %s2509_s2, 4  ;;  %s1241_s2 = sadd.s32 1, %s2509_s2   ;;  %s2509_s2 = sphi %s3116_s2, %s1241_s2  }
 0x473   : >> { %s3122_s6 = scalar_lea.vmem [#allocation7], %s2034_s13  ;;  %v2038_v44 = vcombine.high %v3396_v16, %v3395_v17  ;;  %v2037_v45 = vcombine.low %v3396_v16, %v3395_v17  ;;  %v2040_v46 = vcombine.high %v3394_v18, %v2972_v19  ;;  %v2039_v16 = vcombine.low %v3394_v18, %v2972_v19  ;;  %v3397_v10 = vld [vmem:[#allocation31_spill] sm:$0xff]  ;;  %v3398_v9 = vld [vmem:[#allocation30_spill] sm:$0xff]  ;;  %v3399_v11 = vld [vmem:[#allocation32_spill] sm:$0xff]  ;;  %p1238_p8 = scmp.ge.s32.totalorder %s1241_s2, 2  }
 0x474   : >> { %v3400_v0 = vld [vmem:[#allocation23_spill] sm:$0xff]  ;;  %v3401_v2 = vld [vmem:[#allocation25_spill] sm:$0xff]  ;;  %v3402_v1 = vld [vmem:[#allocation24_spill] sm:$0xff]  ;;  %p2070_p1 = scmp.ne.s32.totalorder (%p1238_p8), %s2493_s30, 1 }
 0x475   : >> { %1377 = vmatprep.subr.bf16.mxu0 %v2038_v44  ;;  %v2042_v44 = vcombine.high %v2975_v20, %v2978_v21  ;;  %v3403_v4 = vld [vmem:[#allocation27_spill] sm:$0xff]  ;;  %v3404_v3 = vld [vmem:[#allocation26_spill] sm:$0xff]  ;;  %v3405_v6 = vld [vmem:[#allocation29_spill] sm:$0xff] }
 0x476   : >> { %1378 = vmatpush1.bf16.msra.mxu0 %v2037_v45  ;;  %v2041_v45 = vcombine.low %v2975_v20, %v2978_v21  ;;  %v3406_v5 = vld [vmem:[#allocation28_spill] sm:$0xff] }
 0x477   : >> { %1379 = vmatprep.subr.bf16.mxu0 %v2040_v46  ;;  %v2044_v46 = vcombine.high %v2981_v22, %v2984_v23 }
 0x478   : >> { %v3125_v42 = vld [vmem:[%s3122_s6] sm:$0xff]  ;;  %v3129_v43 = vld [vmem:[%s3122_s6 + $0x8] sm:$0xff] }
 0x479   : >> { %1246 = vadd.xlane.f32.xlu0 %v3125_v42 }
 0x47a   : >> { %1380 = vmatpush1.bf16.msra.mxu0 %v2039_v16  ;;  %v2045_v16 = vcombine.low %v2987_v24, %v2990_v25 }
 0x47b   : >> { %1381 = vmatprep.subr.bf16.mxu0 %v2042_v44  ;;  %v2049_v44 = vcombine.low %v2999_v28, %v3002_v29 }
 0x47d   : >> { %1248 = vadd.xlane.f32.xlu0 %v3129_v43 }
 0x47e   : >> { %1382 = vmatpush1.bf16.msra.mxu0 %v2041_v45  ;;  %v2052_v45 = vcombine.high %v3005_v54, %v3008_v55 }
 0x47f   : >> { %1383 = vmatprep.subr.bf16.mxu0 %v2044_v46  ;;  %v2051_v46 = vcombine.low %v3005_v54, %v3008_v55 }
 0x506   : >> { %v1247_v47 = vpop.xlane.xlu0 %1246 }
 0x507   : >> { %v1251_v48 = vmul.f32 0.0078125, %v1247_v47  ;;  %v2043_v47 = vcombine.low %v2981_v22, %v2984_v23 }
 0x509   : >> { %v1253_v49 = vsub.f32 %v3125_v42, %v1251_v48  ;;  %1384 = vmatpush1.bf16.msra.mxu0 %v2043_v47  ;;  %v2048_v48 = vcombine.high %v2993_v26, %v2996_v27  ;;  %v2061_v47 = vcombine.low %v3398_v9, %v3397_v10 }
 0x50a   : >> { %v1249_v50 = vpop.xlane.xlu0 %1248 }
 0x50b   : >> { %v1252_v51 = vmul.f32 0.0078125, %v1249_v50  ;;  %v1255_v52 = vmul.f32 %v1253_v49, %v1253_v49  ;;  %v2520_v50 = vmov 0   ;;  %2103 = vmatprep.subr.bf16.mxu1 %v2061_v47 }
 0x50c   : >> { %1409 = vmatprep.mubr.bf16.mxu0 %v2520_v50 }
 0x50d   : >> { %v1254_v53 = vsub.f32 %v3129_v43, %v1252_v51  ;;  %1257 = vadd.xlane.f32.xlu1 %v1255_v52  ;;  %v2047_v51 = vcombine.low %v2993_v26, %v2996_v27  ;;  %v2050_v52 = vcombine.high %v2999_v28, %v3002_v29 }
 0x50f   : >> { %v1256_v41 = vmul.f32 %v1254_v53, %v1254_v53 }
 0x511   : >> { %1259 = vadd.xlane.f32.xlu1 %v1256_v41  ;;  %v2046_v41 = vcombine.high %v2987_v24, %v2990_v25 }
 0x513   : >> { %1385 = vmatprep.subr.bf16.mxu0 %v2046_v41  ;;  %v2053_v41 = vcombine.low %v3014_v57, %v3017_v58 }
 0x514   : >> { %1386 = vmatpush1.bf16.msra.mxu0 %v2045_v16  ;;  %v2062_v16 = vcombine.low %v3399_v11, %v3071_v12 }
 0x515   : >> { %1387 = vmatprep.subr.bf16.mxu0 %v2048_v48  ;;  %2104 = vmatpush3.bf16.msra.mxu1 %v2053_v41  ;;  %v2054_v48 = vcombine.low %v3020_v59, %v3023_v60 }
 0x516   : >> { %2105 = vmatprep.subr.bf16.mxu1 %v2062_v16 }
 0x518   : >> { %1388 = vmatpush1.bf16.msra.mxu0 %v2047_v51 }
 0x519   : >> { %1389 = vmatprep.subr.bf16.mxu0 %v2050_v52  ;;  %2106 = vmatpush3.bf16.msra.mxu1 %v2054_v48 }
 0x51c   : >> { %1390 = vmatpush1.bf16.msra.mxu0 %v2049_v44 }
 0x51d   : >> { %1391 = vmatprep.subr.bf16.mxu0 %v2052_v45 }
 0x520   : >> { %1392 = vmatpush1.bf16.msra.mxu0 %v2051_v46 }
 0x59a   : >> { %v1258_v50 = vpop.xlane.xlu1 %1257 }
 0x59b   : >> { %v1261_v51 = vmul.f32 0.0078125, %v1258_v50  ;;  %v2063_v50 = vcombine.low %v3074_v13, %v3077_v30 }
 0x59d   : >> { %v1263_v52 = vadd.f32 1e-05, %v1261_v51  ;;  %v2055_v51 = vcombine.low %v3026_v61, %v3029_v62  ;;  %2107 = vmatprep.subr.bf16.mxu1 %v2063_v50 }
 0x59e   : >> { %v1260_v44 = vpop.xlane.xlu1 %1259 }
 0x59f   : >> { %2299 = vrsqrt.f32 %v1263_v52  ;;  %v1262_v45 = vmul.f32 0.0078125, %v1260_v44  ;;  %2108 = vmatpush3.bf16.msra.mxu1 %v2055_v51  ;;  %v2059_v52 = vcombine.low %v3406_v5, %v3405_v6  ;;  %v2068_v44 = vcombine.low %v3104_v39, %v3107_v40 }
 0x5a1   : >> { %v1264_v46 = vadd.f32 1e-05, %v1262_v45  ;;  %v2060_v45 = vcombine.low %v3056_v7, %v3059_v8 }
 0x5a3   : >> { %2301 = vrsqrt.f32 %v1264_v46  ;;  %v1287_v46 = vlaneseq }
 0x5a9   : >> { %v2300_v9 = vpop.eup %2299 }
 0x5aa   : >> { %v1267_v10 = vmul.f32 %v2300_v9, %v1253_v49  ;;  %v2065_v9 = vcombine.low %v3086_v33, %v3089_v34  ;;  %v2058_v49 = vcombine.low %v3404_v3, %v3403_v4 }
 0x5ac   : >> { %v1275_v47 = vmul.f32 %v2953_v14, %v1267_v10  ;;  %v2057_v10 = vcombine.low %v3402_v1, %v3401_v2 }
 0x5ad   : >> { %v2302_v17 = vpop.eup %2301 }
 0x5ae   : >> { %v1268_v18 = vmul.f32 %v2302_v17, %v1254_v53  ;;  %v1283_v11 = vadd.f32 %v2960_v15, %v1275_v47  ;;  %v2064_v17 = vcombine.low %v3080_v31, %v3083_v32  ;;  %v2067_v53 = vcombine.low %v3098_v37, %v3101_v38 }
 0x5af   : >> { %v1288_v47 = vshrl.u32 %v1287_v46, 7 }
 0x5b0   : >> { %v1276_v41 = vmul.f32 %v2953_v14, %v1268_v18  ;;  %v2056_v18 = vcombine.low %v3032_v63, %v3400_v0  ;;  %2109 = vmatprep.subr.bf16.mxu1 %v2064_v17 }
 0x5b2   : >> { %v1284_v16 = vadd.f32 %v2960_v15, %v1276_v41  ;;  %2110 = vmatpush3.bf16.msra.mxu1 %v2056_v18  ;;  %v1289_v41 = vsub.s32 0, %v1288_v47 }
 0x5b3   : >> { %2111 = vmatprep.subr.bf16.mxu1 %v2065_v9 }
 0x5b4   : >> { %v1285_v48 = vpack.c.bf16 %v1284_v16, %v1283_v11  ;;  %v2066_v11 = vcombine.low %v3092_v35, %v3095_v36  ;;  %v1293_v16 = vsub.s32 1, %v1288_v47 }
 0x5b6   : >> { %1410 = vmatmul.mubr.bf16.vlgmr.msra.gmra.mrb[0].mxu0 %v1285_v48  ;;  %2112 = vmatpush3.bf16.msra.mxu1 %v2057_v10  ;;  %v1290_v48 = vrot.slane %v3011_v56, %v1289_v41  ;;  %v1294_v50 = vrot.slane %v3011_v56, %v1293_v16 }
 0x5b7   : >> { %2113 = vmatprep.subr.bf16.mxu1 %v2066_v11 }
 0x5ba   : >> { %2114 = vmatpush3.bf16.msra.mxu1 %v2058_v49 }
 0x5bb   : >> { %2115 = vmatprep.subr.bf16.mxu1 %v2067_v53 }
 0x5be   : >> { %2116 = vmatpush3.bf16.msra.mxu1 %v2059_v52 }
 0x5bf   : >> { %2117 = vmatprep.subr.bf16.mxu1 %v2068_v44 }
 0x5c2   : >> { %2118 = vmatpush3.bf16.msra.mxu1 %v2060_v45 }
 0x689   : >> { %v1411_v51 = vpop.f32.mrb[0].mxu0 }
 0x68a   : >> { %v1412_v17 = vadd.f32 %v1411_v51, %v1290_v48  ;;  %v1413_v18 = vpop.f32.mrb[1].mxu0 }
 0x68b   : >> { %v1414_v9 = vadd.f32 %v1413_v18, %v1294_v50  ;;  %v1415_v10 = vpop.f32.mrb[2].mxu0 }
 0x68c   : >> { %v1424_v11 = vmul.f32 0.70710677, %v1412_v17  ;;  %v1416_v49 = vadd.f32 %v1415_v10, %v1290_v48  ;;  %v1417_v53 = vpop.f32.mrb[3].mxu0  ;;  %v1420_v2 = vmul.f32 0.5, %v1412_v17 }
 0x68d   : >> { %v1425_v52 = vmul.f32 0.70710677, %v1414_v9  ;;  %v1418_v0 = vadd.f32 %v1417_v53, %v1294_v50  ;;  %v1421_v4 = vmul.f32 0.5, %v1414_v9 }
 0x68e   : >> { %2303 = verf.f32 %v1424_v11  ;;  %v1426_v44 = vmul.f32 0.70710677, %v1416_v49  ;;  %v1422_v18 = vmul.f32 0.5, %v1416_v49 }
 0x68f   : >> { %2305 = verf.f32 %v1425_v52  ;;  %v1427_v45 = vmul.f32 0.70710677, %v1418_v0  ;;  %v1423_v48 = vmul.f32 0.5, %v1418_v0  ;;  %v3407_v0 = vld [vmem:[#allocation33_spill] sm:$0xff] }
 0x690   : >> { %2307 = verf.f32 %v1426_v44 }
 0x691   : >> { %2309 = verf.f32 %v1427_v45 }
 0x698   : >> { %v2304_v46 = vpop.eup %2303 }
 0x699   : >> { %v2306_v47 = vpop.eup %2305  ;;  %v1432_v41 = vadd.f32 1.0, %v2304_v46 }
 0x69a   : >> { %v2308_v16 = vpop.eup %2307  ;;  %v1433_v1 = vadd.f32 1.0, %v2306_v47 }
 0x69b   : >> { %v2310_v51 = vpop.eup %2309  ;;  %v1434_v3 = vadd.f32 1.0, %v2308_v16  ;;  %v1436_v5 = vmul.f32 %v1432_v41, %v1420_v2 }
 0x69c   : >> { %v1435_v10 = vadd.f32 1.0, %v2310_v51  ;;  %v1437_v11 = vmul.f32 %v1433_v1, %v1421_v4 }
 0x69d   : >> { %v1438_v50 = vmul.f32 %v1434_v3, %v1422_v18 }
 0x69e   : >> { %v1439_v53 = vmul.f32 %v1435_v10, %v1423_v48 }
 0x69f   : >> { %v1440_v52 = vpack.c.bf16 %v1438_v50, %v1436_v5 }
 0x6a0   : >> { %v1441_v44 = vpack.c.bf16 %v1439_v53, %v1437_v11 }
 0x6a2   : >> { %1570 = vmatprep.mubr.bf16.mxu1 %v1441_v44 }
 0x6a3   : >> { %1571 = vmatmul.mubr.bf16.vlgmr.msra.gmra.mrb[0].mxu1 %v1440_v52 }
 0x776   : >> { %v2119_v45 = vpop.f32.mrb[0].mxu1 }
 0x777   : >> { %v2120_v46 = vpop.f32.mrb[1].mxu1 }
 0x778   : >> { %v2121_v47 = vadd.f32 %v2120_v46, %v2119_v45  ;;  %v2122_v6 = vpop.f32.mrb[2].mxu1 }
 0x779   : >> { %v2123_v17 = vpop.f32.mrb[3].mxu1 }
 0x77a   : >> { %v1579_v49 = vadd.f32 %v2121_v47, %v3125_v42  ;;  %v2124_v9 = vadd.f32 %v2123_v17, %v2122_v6  ;;  %1240 = sbr.rel (!%p1238_p8) target bundleno = 1138 (0x472), region = 216 }
 0x77c   : >> { %v1587_v16 = vadd.f32 %v3407_v0, %v1579_v49  ;;  %v1580_v2 = vadd.f32 %v2124_v9, %v3129_v43 }
 0x77e   : >> { %1589 = vst [vmem:[%s3122_s6] sm:$0xff] %v1587_v16  ;;  %v1588_v1 = vadd.f32 %v3407_v0, %v1580_v2 }
 0x780   : >> { %1590 = vst [vmem:[%s3122_s6 + $0x8] sm:$0xff] %v1588_v1 }
 0x781   : > { %1594 = sbr.rel (%p2070_p1) target bundleno = 2174 (0x87e), region = 118  ;;  %s3408_s23 = sld [smem:[#allocation41_spill]] (!%p2070_p1)  ;;  %v2521_v4 = vmov (!%p2070_p1), 0.0   ;;  %vm2522_vm4 = vmmov (!%p2070_p1), 0   ;;  %vm1645_vm5 = vcmask (!%p2070_p1), 1041409  }
 0x782   : > { %2158 = vmatprep.subr.bf16.mxu0 (!%p2070_p1), %v2521_v4  ;;  %2174 = vmatprep.mubr.msk.bf16.mxu0 (!%p2070_p1), %vm2522_vm4, %v2521_v4  ;;  %s3409_s13 = sld [smem:[#allocation42_spill]] (!%p2070_p1) }
 0x787   : > { %v2311_v3 = vld [vmem:[%s3408_s23] sm:$0xff] (!%p2070_p1)   ;;  %v2312_v5 = vld [vmem:[%s3408_s23 + $0x8] sm:$0xff] (!%p2070_p1)   ;;  %v2313_v14 = vld [vmem:[%s3408_s23 + $0x10] sm:$0xff] (!%p2070_p1)  }
 0x788   : > { %2159 = vmatpush3.bf16.msra.mxu0 %v2311_v3  ;;  %v1595_v15 = vld [vmem:[#allocation7] sm:$0xff]  ;;  %v1596_v19 = vld [vmem:[#allocation7 + $0x8] sm:$0xff]  ;;  %v1597_v20 = vld [vmem:[#allocation7 + $0x10] sm:$0xff] }
 0x789   : > { %2160 = vmatprep.subr.bf16.mxu0 %v2521_v4  ;;  %v1598_v21 = vld [vmem:[#allocation7 + $0x18] sm:$0xff]  ;;  %v1599_v22 = vadd.f32 %v1596_v19, %v1595_v15  ;;  %v2315_v28 = vld [vmem:[%s3408_s23 + $0x20] sm:$0xff]   ;;  %v2316_v57 = vld [vmem:[%s3408_s23 + $0x28] sm:$0xff]  }
 0x78a   : > { %v2314_v23 = vld [vmem:[%s3408_s23 + $0x18] sm:$0xff]   ;;  %v1606_v24 = vadd.f32 %v1598_v21, %v1597_v20  ;;  %v2317_v62 = vld [vmem:[%s3408_s23 + $0x30] sm:$0xff]   ;;  %v2071_v34 = vld [vmem:[%s3409_s13] ss:$0 sm:$0xff] }
 0x78b   : > { %v1600_v25 = vrot.slane %v1599_v22, 4  ;;  %v2318_v12 = vld [vmem:[%s3408_s23 + $0x38] sm:$0xff]  }
 0x78c   : > { %2161 = vmatpush3.bf16.msra.mxu0 %v2312_v5  ;;  %v1607_v26 = vrot.slane %v1606_v24, 4 }
 0x78d   : > { %2162 = vmatprep.subr.bf16.mxu0 %v2521_v4  ;;  %v1601_v27 = vadd.f32 %v1600_v25, %v1599_v22 }
 0x78e   : > { %v1608_v29 = vadd.f32 %v1607_v26, %v1606_v24 }
 0x78f   : > { %v1602_v54 = vrot.slane %v1601_v27, 2 }
 0x790   : > { %2163 = vmatpush3.bf16.msra.mxu0 %v2313_v14  ;;  %v1609_v55 = vrot.slane %v1608_v29, 2 }
 0x791   : > { %2164 = vmatprep.subr.bf16.mxu0 %v2521_v4  ;;  %v1603_v56 = vadd.f32 %v1602_v54, %v1601_v27 }
 0x792   : > { %v1610_v58 = vadd.f32 %v1609_v55, %v1608_v29 }
 0x793   : > { %v1604_v59 = vrot.slane %v1603_v56, 1 }
 0x794   : > { %2165 = vmatpush3.bf16.msra.mxu0 %v2314_v23  ;;  %v1611_v60 = vrot.slane %v1610_v58, 1 }
 0x795   : > { %2166 = vmatprep.subr.bf16.mxu0 %v2521_v4  ;;  %v1605_v61 = vadd.f32 %v1604_v59, %v1603_v56 }
 0x796   : > { %v1612_v63 = vadd.f32 %v1611_v60, %v1610_v58 }
 0x797   : > { %v1614_v6 = vmul.f32 0.0625, %v1605_v61 }
 0x798   : > { %2167 = vmatpush3.bf16.msra.mxu0 %v2315_v28  ;;  %v1615_v7 = vmul.f32 0.0625, %v1612_v63 }
 0x799   : > { %2168 = vmatprep.subr.bf16.mxu0 %v2521_v4  ;;  %v1632_v8 = vpack.c.bf16 %v1614_v6, %v1614_v6 }
 0x79a   : > { %v1633_v13 = vpack.c.bf16 %v1615_v7, %v1615_v7 }
 0x79b   : > { %v1643_v30 = vunpack.c.l.b16 %v1632_v8 }
 0x79c   : > { %2169 = vmatpush3.bf16.msra.mxu0 %v2316_v57  ;;  %v1644_v31 = vunpack.c.l.b16 %v1633_v13 }
 0x79d   : > { %2170 = vmatprep.subr.bf16.mxu0 %v2521_v4 }
 0x79e   : > { %v1646_v32 = vsel %vm1645_vm5, %v1644_v31, %v1643_v30 }
 0x79f   : > { %v1647_v33 = vpack.c.b16 %v1646_v32, %v1646_v32 }
 0x7a0   : > { %2171 = vmatpush3.bf16.msra.mxu0 %v2317_v62 }
 0x7a1   : > { %2172 = vmatprep.subr.bf16.mxu0 %v2521_v4 }
 0x7a4   : > { %2173 = vmatpush3.bf16.msra.mxu0 %v2318_v12 }
 0x7a7   : > { %2175 = vmatmul.mubr.bf16.vlgmr.msra.gmra.mrb[0].mxu0 %v1647_v33 }
 0x87a   : > { %v1731_v35 = vpop.f32.mrb[0].mxu0 }
 0x87b   : > { %v1732_v36 = vadd.f32 %v2071_v34, %v1731_v35  ;;  %v2176_v37 = vpop.f32.mrb[1].mxu0 }
 0x87c   : > { %v1734_v38 = vpop.f32.mrb[2].mxu0 }
 0x87d   : > { %1737 = vst [vmem:[#allocation8] sm:$0x3] %v1732_v36  ;;  %v2177_v39 = vpop.f32.mrb[3].mxu0 }
 0x87e PF: > { %s3410_s6 = sld [smem:[#allocation17_spill]]  ;;  %s2523_s19 = smov [#allocation7]  }
 0x87f   : > { %s1747_s17 = sshll.u32 %s2523_s19, 4  ;;  %s1748_s17 = int_to_ptr.vmem [resolvable:$true] %s1747_s17 }
 0x880   : > { %s2379_s0 = scalar_lea.vmem %s1748_s17, 512  ;;  %p2386_p6 = scmp.lt.s32.totalorder %s1748_s17, %s1748_s17 }
 0x881   : > { %p2380_p13 = scmp.ne.s32.totalorder %s1748_s17, %s2379_s0  ;;  %p2387_p10 = scmp.lt.s32.totalorder %s2379_s0, %s2379_s0 }
 0x883   : > { %p2388_p12 = por %p2387_p10, %p2386_p6 }
 0x884   : > { %s3411_s24 = sadd.s32 4294967295, %s3410_s6  }
 0x885   : > { %p3243_p2 = scmp.eq.s32.totalorder %s3411_s24, 1 }
 0x887   : > { %p2381_p3 = pnand %p2380_p13, %p3243_p2 }
 0x889   : > { %p2382_p5 = pneg %p2381_p3 }
 0x88b   : > { %p2389_p0 = pnand %p2388_p12, %p2382_p5 }
 0x88d   : > { %2392 = shalt.err (!%p2389_p0)
}
 0x88e   : > { %s3413_s25 = sld [smem:[#allocation43_spill]] }
 0x894   : > { %s2393_s28 = scalar_lea.hbm %s3413_s25, 512 }
 0x895   : > { %p2394_p7 = scmp.ne.s32.totalorder %s3413_s25, %s2393_s28  ;;  %p2399_p4 = scmp.lt.u32.totalorder %s2393_s28, %s3413_s25 }
 0x897   : > { %p2395_p9 = pnand %p2394_p7, %p3243_p2 }
 0x899   : > { %p2396_p11 = pneg %p2395_p9 }
 0x89b   : > { %p2401_p8 = pnand %p2399_p4, %p2396_p11 }
 0x89d   : > { %2404 = shalt.err (!%p2401_p8)
}
 0x89e   : > { %s2524_s15 = smov 128   ;;  %s2525_s5 = smov 8  }
 0x89f   : > { %2183 = dma.vmem_to_hbm [thread:$0]  (%p3243_p2), %s1748_s17, 512, %s3413_s25, [#allocation4], %s2524_s15, %s2524_s15, %s2525_s5  }
 0x8a0   : > { %s2526_s2 = smov [#allocation8]  }
 0x8a1   : > { %s1763_s13 = sshll.u32 %s2526_s2, 4  ;;  %s1764_s13 = int_to_ptr.vmem [resolvable:$true] %s1763_s13 }
 0x8a2   : > { %s2405_s6 = scalar_lea.vmem %s1764_s13, 32  ;;  %p2412_p5 = scmp.lt.s32.totalorder %s1764_s13, %s1764_s13 }
 0x8a3   : > { %p2406_p1 = scmp.ne.s32.totalorder %s1764_s13, %s2405_s6  ;;  %p2413_p6 = scmp.lt.s32.totalorder %s2405_s6, %s2405_s6 }
 0x8a5   : > { %p2407_p13 = pnand %p2406_p1, %p3243_p2  ;;  %p2414_p10 = por %p2413_p6, %p2412_p5 }
 0x8a7   : > { %p2408_p3 = pneg %p2407_p13 }
 0x8a9   : > { %p2415_p12 = pnand %p2414_p10, %p2408_p3 }
 0x8ab   : > { %2418 = shalt.err (!%p2415_p12)
}
 0x8ac   : > { %s3414_s0 = sld [smem:[#allocation44_spill]] }
 0x8b2   : > { %s3415_s26 = smov %s3414_s0  ;;  %s2419_s30 = scalar_lea.hbm %s3414_s0, 32 }
 0x8b3   : > { %p2420_p0 = scmp.ne.s32.totalorder %s3415_s26, %s2419_s30  ;;  %p2425_p11 = scmp.lt.u32.totalorder %s2419_s30, %s3415_s26 }
 0x8b5   : > { %p2421_p7 = pnand %p2420_p0, %p3243_p2 }
 0x8b7   : > { %p2422_p9 = pneg %p2421_p7 }
 0x8b9   : > { %p2427_p4 = pnand %p2425_p11, %p2422_p9 }
 0x8bb   : > { %2430 = shalt.err (!%p2427_p4)
}
 0x8bc   : > { %2185 = dma.vmem_to_hbm [thread:$0]  (%p3243_p2), %s1764_s13, 32, %s3415_s26, [#allocation9]  }
 0x8bd   : > { %2472 = dma.done.wait (%p3243_p2), [#allocation4], 512  }
 0x8be   : > { %2474 = vsyncadd (%p3243_p2), [#allocation4], 4294966784 }
 0x8bf   : > { %2476 = dma.done.wait (%p3243_p2), [#allocation9], 32  }
 0x8c0   : > { %2478 = vsyncadd (%p3243_p2), [#allocation9], 4294967264 }
 0x8c1 PF: > { %s3416_s15 = sld [smem:[#allocation17_spill]]  ;;  %s3417_s27 = sld [smem:[#allocation14_spill]] }
 0x8c2   : > { %s3418_s28 = sld [smem:[#allocation15_spill]]  ;;  %s3419_s29 = sld [smem:[#allocation19_spill]] }
 0x8c3   : > { %s3420_s30 = sld [smem:[#allocation16_spill]]  ;;  %s3421_s0 = sld [smem:[#allocation18_spill]] }
 0x8c7   : > { %s37_s19 = sadd.s32 1, %s3416_s15  }
 0x8c8   : > { %p34_p8 = scmp.ge.s32.totalorder %s37_s19, 4  }
 0x8ca   :  { %36 = sbr.rel (!%p34_p8) target bundleno = 20 (0x14), region = 227 }
 0x8d1   :  { %1780 = vsyncpa [#allocation3], 1 }
 0x8d2   :  { %1782 = vsyncpa [#allocation3 + $0x1], 1 }
 0x8d3   :  { %1783 = vsyncpa [#allocation6], 1 }
 0x8d4   :  { %1785 = vsyncpa [#allocation6 + $0x1], 1 }
 0x8d5   :  { %1786 = vsyncpa [#allocation4], 1 }
 0x8d6   :  { %1788 = vsyncpa [#allocation4 + $0x1], 1 }
 0x8d7   :  { %1789 = vsyncpa [#allocation9], 1 }

</bundles_post_ra>
